<compile_context>
chip_gen: v7x
topology: tpu7x:2x2x1
jax: 0.10.0
libtpu: 0.0.40
codegen_flags: <defaults>
</compile_context>

<pallas_src>
import functools

import jax
import jax.numpy as jnp
from jax import lax
from jax.experimental import pallas as pl
from jax.experimental.pallas import tpu as pltpu

EPS = 1e-8


def _switch_value(index, branches, operand):
    """Value-returning static switch built from nested two-way lax.cond."""
    def build(lo, hi):
        if hi - lo == 1:
            fn = branches[lo]
            return lambda op: fn(op)
        mid = (lo + hi) // 2
        lo_fn, hi_fn = build(lo, mid), build(mid, hi)
        return lambda op: lax.cond(index < mid, lo_fn, hi_fn, op)
    return build(0, len(branches))(operand)


# --------------------------------------------------------------------------- #
#                                   kernel                                    #
# --------------------------------------------------------------------------- #
def _stacked_tcn_kernel(x_ref, spkT_ref, w1s_ref, w1x_ref, wdw_ref, w2_ref,
                        cpar_ref, b2_ref, out_ref, seg_sc, spk_sc,
                        *, B, T, dilations):
    blk = pl.program_id(0)
    Cc, K = wdw_ref.shape[1], wdw_ref.shape[2]
    c0 = (K - 1) // 2
    BT = B * T
    inv_n = 1.0 / float(Cc * T)

    # ---- block 0 only: the resident output block doubles as the activation /
    # residual accumulator; fold the speaker embedding with one MXU matmul
    # (1x1 conv over concat([x, spk.repeat(T)]) == W_x @ x + W_spk @ spk).
    @pl.when(blk == 0)
    def _():
        out_ref[...] = x_ref[...]
        spk_sc[...] = jnp.dot(w1s_ref[...], spkT_ref[...],
                              preferred_element_type=jnp.float32)

    x = out_ref[...].astype(jnp.float32)      # (C_in, B*T) residual input
    w1x = w1x_ref[0]                          # (Cc, C_in)   f32 or bf16
    wdw = wdw_ref[0]                          # (Cc, K)      f32
    w2 = w2_ref[0]                            # (C_in, Cc)   f32 or bf16
    cp = cpar_ref[0]                          # (Cc, 8) packed per-channel params
    b1, g1g, g1b = cp[:, 0:1], cp[:, 1:2], cp[:, 2:3]
    bdw, g2g, g2b = cp[:, 3:4], cp[:, 4:5], cp[:, 5:6]
    a1, a2 = cp[:, 6:7], cp[:, 7:8]
    b2 = b2_ref[0]                            # (C_in, 1)

    # Speaker term exists only in block 0 (FTCN): fold it into the 1x1-conv
    # bias columns (tiny (Cc, B) select) instead of adding a zero slab later.
    bias_cols = b1 + jnp.where(blk == 0, spk_sc[...], 0.0)         # (Cc, B)

    # ---- 1x1 conv #1: one wide MXU matmul over all B*T lanes (f32 accumulate).
    y = jnp.dot(w1x, x.astype(w1x.dtype), preferred_element_type=jnp.float32)

    # ---- per sample: bias + PReLU #1 + gLN #1 (two-pass mean / centered var),
    # write the normalised segment to its lane-aligned slot of the scratch slab.
    for b in range(B):
        lo, hi = b * T, (b + 1) * T
        seg = y[:, lo:hi] + bias_cols[:, b:b + 1]
        seg = jnp.where(seg > 0, seg, a1 * seg)                    # PReLU #1
        mu = jnp.sum(seg) * inv_n
        d = seg - mu
        r = lax.rsqrt(jnp.sum(d * d) * inv_n + EPS)                # EUP rsqrt
        seg_sc[:, lo:hi] = d * (g1g * r) + g1b                     # gLN #1

    # ---- depthwise dilated conv on the whole (Cc, B*T) slab. The per-block
    # static dilation selects a branch, so every pltpu.roll shift / edge mask
    # is a compile-time constant and the result stays local (no VMEM round-trip).
    tpos = lax.broadcasted_iota(jnp.int32, (1, BT), 1) % T         # in-sample t

    def make_branch(dil):
        def branch(s):
            acc = wdw[:, c0:c0 + 1] * s                            # center tap
            for k in range(K):
                if k == c0:
                    continue
                off = (k - c0) * dil                               # static int
                rolled = pltpu.roll(s, (-off) % BT, axis=1)        # XLU rotate
                mask = (tpos + off >= 0) & (tpos + off < T)        # 'same' pad
                acc = acc + wdw[:, k:k + 1] * jnp.where(mask, rolled, 0.0)
            return acc
        return branch

    dw = _switch_value(blk, [make_branch(d) for d in dilations], seg_sc[...])

    z = dw + bdw
    z = jnp.where(z > 0, z, a2 * z)                                # PReLU #2

    # ---- per sample: gLN #2, 1x1 conv #2 back to C_in, bias + residual, and a
    # lane-aligned store straight into the resident output block.
    for b in range(B):
        lo, hi = b * T, (b + 1) * T
        zb = z[:, lo:hi]
        mu = jnp.sum(zb) * inv_n
        d = zb - mu
        r = lax.rsqrt(jnp.sum(d * d) * inv_n + EPS)
        seg2 = d * (g2g * r) + g2b                                 # gLN #2
        res = (jnp.dot(w2, seg2.astype(w2.dtype),
                       preferred_element_type=jnp.float32)
               + b2 + x[:, lo:hi])
        out_ref[:, lo:hi] = res.astype(out_ref.dtype)


# --------------------------------------------------------------------------- #
#                           packing + wrapper                                 #
# --------------------------------------------------------------------------- #
def pack_stacked_params(params_list, *, kernel_size, dilation,
                        matmul_dtype=jnp.float32):
    """Stack per-block weights on a leading block axis; pack every 1-wide
    per-channel param into one (Cc, 8) slab; optionally store the 1x1-conv
    weights in bf16 for the MXU (v6e/v7x), accumulation stays f32."""
    NB = len(params_list)
    Cc = params_list[0]["w1x"].shape[0]
    # Matches the PyTorch StackedTCN: the FTCN block uses the `dilation`
    # argument, TCN #i uses 2**i (independent of the base dilation).
    dilations = tuple([dilation] + [2 ** i for i in range(1, NB)])

    def cpack(p):
        a1 = jnp.broadcast_to(jnp.reshape(p["a1"], (1, 1)), (Cc, 1))
        a2 = jnp.broadcast_to(jnp.reshape(p["a2"], (1, 1)), (Cc, 1))
        return jnp.concatenate(
            [p["b1"], p["g1g"], p["g1b"], p["bdw"], p["g2g"], p["g2b"], a1, a2],
            axis=1)

    return {
        "w1s": params_list[0]["w1s"].astype(jnp.float32),              # (Cc, S)
        "w1x": jnp.stack([p["w1x"] for p in params_list]).astype(matmul_dtype),
        "wdw": jnp.stack([p["wdw"] for p in params_list]).astype(jnp.float32),
        "w2": jnp.stack([p["w2"] for p in params_list]).astype(matmul_dtype),
        "cpar": jnp.stack([cpack(p) for p in params_list]).astype(jnp.float32),
        "b2": jnp.stack([p["b2"] for p in params_list]).astype(jnp.float32),
        "dilations": dilations,
        "kernel_size": kernel_size,
    }


def stacked_tcn_pallas(x, spk, packed):
    """StackedTCN.forward: the whole FTCN + TCN stack in a single pallas_call."""
    B, C_in, T = x.shape
    NB, Cc, K = packed["wdw"].shape
    S = packed["w1s"].shape[1]
    dilations = packed["dilations"]
    assert len(dilations) == NB
    assert K % 2 == 1, "only odd kernel_size gives exact 'same' padding here"
    assert T % 128 == 0, "time axis must be a multiple of 128 lanes"
    BT = B * T

    # layout plumbing: (B, C, T) -> lane-dense (C, B*T) slab; (B, S) -> (S, B)
    x2 = jnp.transpose(x, (1, 0, 2)).reshape(C_in, BT)
    spk_t = jnp.transpose(spk)

    # constant-index inputs are fetched once -> single-buffered (saves VMEM);
    # per-block weights keep the default double buffer so they prefetch.
    const2 = lambda shape: pl.BlockSpec(shape, lambda blk: (0, 0),
                                        pipeline_mode=pl.Buffered(1))
    per_blk = lambda shape: pl.BlockSpec(shape, lambda blk: (blk, 0, 0))

    kern = functools.partial(_stacked_tcn_kernel, B=B, T=T, dilations=dilations)

    wbytes = packed["w1x"].dtype.itemsize
    flops_pw = 2 * (2 * Cc * C_in * BT)          # the two 1x1 convs, per block
    flops_dw = 2 * Cc * K * BT                   # depthwise conv, per block
    flops_ew = 24 * Cc * BT                      # PReLU / gLN elementwise
    cost = pl.CostEstimate(
        flops=NB * (flops_pw + flops_dw + flops_ew),
        transcendentals=NB * 2 * B,
        bytes_accessed=(4 * (2 * C_in * BT + Cc * S + B * S)
                        + NB * (wbytes * 2 * Cc * C_in
                                + 4 * (Cc * K + Cc * 8 + C_in))))

    out2 = pl.pallas_call(
        kern,
        grid=(NB,),
        in_specs=[
            const2((C_in, BT)),                  # x (read at block 0 only)
            const2((S, B)),                      # speaker embeddings, (S, B)
            const2((Cc, S)),                     # W_spk (block 0 only)
            per_blk((1, Cc, C_in)),              # W1 (1x1 conv in)
            per_blk((1, Cc, K)),                 # depthwise weights
            per_blk((1, C_in, Cc)),              # W2 (1x1 conv out)
            per_blk((1, Cc, 8)),                 # packed per-channel params
            per_blk((1, C_in, 1)),               # output bias b2
        ],
        # constant index -> the output block is VMEM-resident across the block
        # axis and doubles as the residual accumulator; one HBM writeback.
        out_specs=pl.BlockSpec((C_in, BT), lambda blk: (0, 0)),
        out_shape=jax.ShapeDtypeStruct((C_in, BT), x.dtype),
        scratch_shapes=[
            pltpu.VMEM((Cc, BT), jnp.float32),   # normalised segs -> depthwise
            pltpu.VMEM((Cc, B), jnp.float32),    # folded speaker bias (block 0)
        ],
        compiler_params=pltpu.CompilerParams(
            dimension_semantics=("arbitrary",),  # sequential block dependency
            vmem_limit_bytes=32 * 1024 * 1024),
        cost_estimate=cost,
    )(x2, spk_t, packed["w1s"], packed["w1x"], packed["wdw"], packed["w2"],
      packed["cpar"], packed["b2"])

    # back to PyTorch Conv1d layout (B, C, T)
    return jnp.transpose(out2.reshape(C_in, B, T), (1, 0, 2))


def stacked_tcn_forward(x, spk, params_list, *, kernel_size, dilation,
                        matmul_dtype=jnp.float32):
    """Convenience entry point mirroring the original per-block param list."""
    packed = pack_stacked_params(params_list, kernel_size=kernel_size,
                                 dilation=dilation, matmul_dtype=matmul_dtype)
    return stacked_tcn_pallas(x, spk, packed)


# --------------------------------- params ---------------------------------- #
def init_block_params(key, C_in, Cc, S, K, with_spk):
    ks = jax.random.split(key, 8)
    scale = 0.1
    return {
        "w1x": scale * jax.random.normal(ks[0], (Cc, C_in), jnp.float32),
        "w1s": (scale * jax.random.normal(ks[1], (Cc, S), jnp.float32)
                if with_spk else jnp.zeros((Cc, S), jnp.float32)),
        "b1": scale * jax.random.normal(ks[2], (Cc, 1), jnp.float32),
        "a1": jnp.full((1, 1), 0.25, jnp.float32),          # PReLU default init
        "g1g": jnp.ones((Cc, 1), jnp.float32),
        "g1b": jnp.zeros((Cc, 1), jnp.float32),
        "wdw": scale * jax.random.normal(ks[3], (Cc, K), jnp.float32),
        "bdw": scale * jax.random.normal(ks[4], (Cc, 1), jnp.float32),
        "a2": jnp.full((1, 1), 0.25, jnp.float32),
        "g2g": jnp.ones((Cc, 1), jnp.float32),
        "g2b": jnp.zeros((Cc, 1), jnp.float32),
        "w2": scale * jax.random.normal(ks[5], (C_in, Cc), jnp.float32),
        "b2": scale * jax.random.normal(ks[6], (C_in, 1), jnp.float32),
    }


# ---------------------------- pure-JAX reference ---------------------------- #
def _prelu(y, a):
    return jnp.where(y > 0, y, a * y)


def _gln(y, g, b):
    mu = jnp.mean(y, axis=(1, 2), keepdims=True)
    var = jnp.mean((y - mu) ** 2, axis=(1, 2), keepdims=True)
    return g[None] * (y - mu) / jnp.sqrt(var + EPS) + b[None]


def ref_block(x, spk, p, K, dilation):
    B, C_in, T = x.shape
    pad = dilation * (K - 1) // 2
    y = jnp.einsum("oc,bct->bot", p["w1x"], x)
    y = y + jnp.einsum("os,bs->bo", p["w1s"], spk)[:, :, None]
    y = y + p["b1"][None]
    y = _prelu(y, p["a1"][0, 0])
    y = _gln(y, p["g1g"], p["g1b"])
    ypad = jnp.pad(y, ((0, 0), (0, 0), (pad, pad)))
    acc = jnp.zeros_like(y)
    for k in range(K):
        s = k * dilation
        acc = acc + p["wdw"][None, :, k:k + 1] * ypad[:, :, s:s + T]
    y = acc + p["bdw"][None]
    y = _prelu(y, p["a2"][0, 0])
    y = _gln(y, p["g2g"], p["g2b"])
    out = jnp.einsum("oc,bct->bot", p["w2"], y) + p["b2"][None]
    return out + x


if __name__ == "__main__":
    key = jax.random.PRNGKey(0)
    # StackedTCN(num_blocks=3, spk_emb=8, in_channels=16, out_channels=32,
    #            kernel_size=3, dilation=1)
    B, C_in, Cc, S, T = 2, 16, 32, 8, 128
    K, dilation, num_blocks = 3, 1, 3

    kx, ksk, kp = jax.random.split(key, 3)
    x = jax.random.normal(kx, (B, C_in, T), jnp.float32)
    spk = jax.random.normal(ksk, (B, S), jnp.float32)

    params = [init_block_params(jax.random.fold_in(kp, i), C_in, Cc, S, K,
                                with_spk=(i == 0))
              for i in range(num_blocks)]

    # pure-JAX reference of the same math
    ref = ref_block(x, spk, params[0], K, dilation)
    for i in range(1, num_blocks):
        ref = ref_block(ref, jnp.zeros_like(spk), params[i], K, 2 ** i)

    # ---- f32 matmul path: exact check against the reference
    packed = pack_stacked_params(params, kernel_size=K, dilation=dilation)
    out = jax.block_until_ready(stacked_tcn_pallas(x, spk, packed))
    assert out.shape == (B, C_in, T)
    err = float(jnp.max(jnp.abs(out - ref)))
    assert bool(jnp.allclose(out, ref, rtol=1e-3, atol=1e-3)), err

    # ---- bf16 matmul path (v6e/v7x MXU option): sanity-check it runs & close
    packed_bf16 = pack_stacked_params(params, kernel_size=K, dilation=dilation,
                                      matmul_dtype=jnp.bfloat16)
    out_bf16 = jax.block_until_ready(stacked_tcn_pallas(x, spk, packed_bf16))
    assert bool(jnp.isfinite(out_bf16).all())
    assert float(jnp.max(jnp.abs(out_bf16 - ref))) < 0.5

    print("KERNEL_OK")
</pallas_src>

<mosaic_0001>
module attributes {stable_mosaic.version = 11 : i64} {
  func.func @_stacked_tcn_kernel(%arg0: i32, %arg1: memref<16x256xf32, #tpu.memory_space<vmem>>, %arg2: memref<8x2xf32, #tpu.memory_space<vmem>>, %arg3: memref<32x8xf32, #tpu.memory_space<vmem>>, %arg4: memref<1x32x16xf32, #tpu.memory_space<vmem>>, %arg5: memref<1x32x3xf32, #tpu.memory_space<vmem>>, %arg6: memref<1x16x32xf32, #tpu.memory_space<vmem>>, %arg7: memref<1x32x8xf32, #tpu.memory_space<vmem>>, %arg8: memref<1x16x1xf32, #tpu.memory_space<vmem>>, %arg9: memref<16x256xf32, #tpu.memory_space<vmem>>, %arg10: memref<32x256xf32, #tpu.memory_space<vmem>>, %arg11: memref<32x2xf32, #tpu.memory_space<vmem>>) attributes {dimension_semantics = [#tpu.dimension_semantics<arbitrary>], iteration_bounds = array<i64: 3>, scalar_prefetch = 0 : i64, scratch_operands = 2 : i64, tpu.core_type = #tpu.core_type<tc>, window_params = [{pipeline_mode = #tpu.pipeline_mode<synchronous>, transform_indices = @transform_0, window_bounds = array<i64: 16, 256>}, {pipeline_mode = #tpu.pipeline_mode<synchronous>, transform_indices = @transform_1, window_bounds = array<i64: 8, 2>}, {pipeline_mode = #tpu.pipeline_mode<synchronous>, transform_indices = @transform_2, window_bounds = array<i64: 32, 8>}, {transform_indices = @transform_3, window_bounds = array<i64: 1, 32, 16>}, {transform_indices = @transform_4, window_bounds = array<i64: 1, 32, 3>}, {transform_indices = @transform_5, window_bounds = array<i64: 1, 16, 32>}, {transform_indices = @transform_6, window_bounds = array<i64: 1, 32, 8>}, {transform_indices = @transform_7, window_bounds = array<i64: 1, 16, 1>}, {pipeline_mode = #tpu.pipeline_mode<synchronous>, transform_indices = @transform_8, window_bounds = array<i64: 16, 256>}]} {
    %c0_i32 = arith.constant 0 : i32
    %0 = arith.cmpi eq, %arg0, %c0_i32 : i32
    %1 = arith.extui %0 : i1 to i32
    %c0_i32_0 = arith.constant 0 : i32
    %2 = arith.cmpi ne, %1, %c0_i32_0 : i32
    scf.if %2 {
      %c0_61 = arith.constant 0 : index
      %c0_62 = arith.constant 0 : index
      %176 = vector.load %arg1[%c0_61, %c0_62] : memref<16x256xf32, #tpu.memory_space<vmem>>, vector<16x256xf32>
      %c0_63 = arith.constant 0 : index
      %c0_64 = arith.constant 0 : index
      %177 = vector.load %arg9[%c0_63, %c0_64] : memref<16x256xf32, #tpu.memory_space<vmem>>, vector<16x256xf32>
      tpu.vector_store %arg9[%c0_63, %c0_64], %176 {strides = array<i32>} : memref<16x256xf32, #tpu.memory_space<vmem>>, vector<16x256xf32>,
      %c0_65 = arith.constant 0 : index
      %c0_66 = arith.constant 0 : index
      %178 = vector.load %arg3[%c0_65, %c0_66] : memref<32x8xf32, #tpu.memory_space<vmem>>, vector<32x8xf32>
      %c0_67 = arith.constant 0 : index
      %c0_68 = arith.constant 0 : index
      %179 = vector.load %arg2[%c0_67, %c0_68] : memref<8x2xf32, #tpu.memory_space<vmem>>, vector<8x2xf32>
      %cst_69 = arith.constant dense<0.000000e+00> : vector<32x2xf32>
      %180 = tpu.matmul %178, %179, %cst_69 {dimension_numbers = #tpu.dot_dimension_numbers<[1], [0], [0], [1], [0, 0, 1, 1], [], []>} : vector<32x8xf32>, vector<8x2xf32>, vector<32x2xf32> -> vector<32x2xf32>
      %c0_70 = arith.constant 0 : index
      %c0_71 = arith.constant 0 : index
      %181 = vector.load %arg11[%c0_70, %c0_71] : memref<32x2xf32, #tpu.memory_space<vmem>>, vector<32x2xf32>
      tpu.vector_store %arg11[%c0_70, %c0_71], %180 {strides = array<i32>} : memref<32x2xf32, #tpu.memory_space<vmem>>, vector<32x2xf32>,
    } else {
    }
    %c0 = arith.constant 0 : index
    %c0_1 = arith.constant 0 : index
    %3 = vector.load %arg9[%c0, %c0_1] : memref<16x256xf32, #tpu.memory_space<vmem>>, vector<16x256xf32>
    %c0_2 = arith.constant 0 : index
    %c0_3 = arith.constant 0 : index
    %c0_4 = arith.constant 0 : index
    %4 = vector.load %arg4[%c0_2, %c0_3, %c0_4] : memref<1x32x16xf32, #tpu.memory_space<vmem>>, vector<1x32x16xf32>
    %5 = vector.shape_cast %4 : vector<1x32x16xf32> to vector<32x16xf32>
    %c0_5 = arith.constant 0 : index
    %c0_6 = arith.constant 0 : index
    %c0_7 = arith.constant 0 : index
    %6 = vector.load %arg5[%c0_5, %c0_6, %c0_7] : memref<1x32x3xf32, #tpu.memory_space<vmem>>, vector<1x32x3xf32>
    %7 = vector.shape_cast %6 : vector<1x32x3xf32> to vector<32x3xf32>
    %c0_8 = arith.constant 0 : index
    %c0_9 = arith.constant 0 : index
    %c0_10 = arith.constant 0 : index
    %8 = vector.load %arg6[%c0_8, %c0_9, %c0_10] : memref<1x16x32xf32, #tpu.memory_space<vmem>>, vector<1x16x32xf32>
    %9 = vector.shape_cast %8 : vector<1x16x32xf32> to vector<16x32xf32>
    %c0_11 = arith.constant 0 : index
    %c0_12 = arith.constant 0 : index
    %c0_13 = arith.constant 0 : index
    %10 = vector.load %arg7[%c0_11, %c0_12, %c0_13] : memref<1x32x8xf32, #tpu.memory_space<vmem>>, vector<1x32x8xf32>
    %11 = vector.shape_cast %10 : vector<1x32x8xf32> to vector<32x8xf32>
    %12 = vector.extract_strided_slice %11 {offsets = [0, 0], sizes = [32, 1], strides = [1, 1]} : vector<32x8xf32> to vector<32x1xf32>
    %13 = vector.extract_strided_slice %11 {offsets = [0, 1], sizes = [32, 1], strides = [1, 1]} : vector<32x8xf32> to vector<32x1xf32>
    %14 = vector.extract_strided_slice %11 {offsets = [0, 2], sizes = [32, 1], strides = [1, 1]} : vector<32x8xf32> to vector<32x1xf32>
    %15 = vector.extract_strided_slice %11 {offsets = [0, 3], sizes = [32, 1], strides = [1, 1]} : vector<32x8xf32> to vector<32x1xf32>
    %16 = vector.extract_strided_slice %11 {offsets = [0, 4], sizes = [32, 1], strides = [1, 1]} : vector<32x8xf32> to vector<32x1xf32>
    %17 = vector.extract_strided_slice %11 {offsets = [0, 5], sizes = [32, 1], strides = [1, 1]} : vector<32x8xf32> to vector<32x1xf32>
    %18 = vector.extract_strided_slice %11 {offsets = [0, 6], sizes = [32, 1], strides = [1, 1]} : vector<32x8xf32> to vector<32x1xf32>
    %19 = vector.extract_strided_slice %11 {offsets = [0, 7], sizes = [32, 1], strides = [1, 1]} : vector<32x8xf32> to vector<32x1xf32>
    %c0_14 = arith.constant 0 : index
    %c0_15 = arith.constant 0 : index
    %c0_16 = arith.constant 0 : index
    %20 = vector.load %arg8[%c0_14, %c0_15, %c0_16] : memref<1x16x1xf32, #tpu.memory_space<vmem>>, vector<1x16x1xf32>
    %21 = vector.shape_cast %20 : vector<1x16x1xf32> to vector<16x1xf32>
    %c0_i32_17 = arith.constant 0 : i32
    %22 = arith.cmpi eq, %arg0, %c0_i32_17 : i32
    %c0_18 = arith.constant 0 : index
    %c0_19 = arith.constant 0 : index
    %23 = vector.load %arg11[%c0_18, %c0_19] : memref<32x2xf32, #tpu.memory_space<vmem>>, vector<32x2xf32>
    %cst = arith.constant 0.000000e+00 : f32
    %24 = vector.broadcast %cst : f32 to vector<32x2xf32>
    %25 = arith.select %22, %23, %24 : vector<32x2xf32>
    %26 = vector.broadcast %12 : vector<32x1xf32> to vector<32x2xf32>
    %27 = arith.addf %26, %25 : vector<32x2xf32>
    %cst_20 = arith.constant dense<0.000000e+00> : vector<32x256xf32>
    %28 = tpu.matmul %5, %3, %cst_20 {dimension_numbers = #tpu.dot_dimension_numbers<[1], [0], [0], [1], [0, 0, 1, 1], [], []>} : vector<32x16xf32>, vector<16x256xf32>, vector<32x256xf32> -> vector<32x256xf32>
    %29 = vector.extract_strided_slice %28 {offsets = [0, 0], sizes = [32, 128], strides = [1, 1]} : vector<32x256xf32> to vector<32x128xf32>
    %30 = vector.extract_strided_slice %27 {offsets = [0, 0], sizes = [32, 1], strides = [1, 1]} : vector<32x2xf32> to vector<32x1xf32>
    %31 = vector.broadcast %30 : vector<32x1xf32> to vector<32x128xf32>
    %32 = arith.addf %29, %31 : vector<32x128xf32>
    %cst_21 = arith.constant 0.000000e+00 : f32
    %33 = vector.broadcast %cst_21 : f32 to vector<32x128xf32>
    %34 = arith.cmpf ogt, %32, %33 : vector<32x128xf32>
    %35 = vector.broadcast %18 : vector<32x1xf32> to vector<32x128xf32>
    %36 = arith.mulf %35, %32 : vector<32x128xf32>
    %37 = arith.select %34, %32, %36 : vector<32x128xi1>, vector<32x128xf32>
    %38 = vector.shape_cast %37 : vector<32x128xf32> to vector<1x32x128xf32>
    %cst_22 = arith.constant dense<0.000000e+00> : vector<1xf32>
    %39 = vector.multi_reduction <add>, %38, %cst_22 [1, 2] : vector<1x32x128xf32> to vector<1xf32>
    %40 = vector.shape_cast %39 : vector<1xf32> to vector<1x1x1xf32>
    %41 = vector.extract %40[0, 0, 0] : f32 from vector<1x1x1xf32>
    %cst_23 = arith.constant 2.44140625E-4 : f32
    %42 = arith.mulf %41, %cst_23 : f32
    %43 = vector.broadcast %42 : f32 to vector<32x128xf32>
    %44 = arith.subf %37, %43 : vector<32x128xf32>
    %45 = arith.mulf %44, %44 : vector<32x128xf32>
    %46 = vector.shape_cast %45 : vector<32x128xf32> to vector<1x32x128xf32>
    %cst_24 = arith.constant dense<0.000000e+00> : vector<1xf32>
    %47 = vector.multi_reduction <add>, %46, %cst_24 [1, 2] : vector<1x32x128xf32> to vector<1xf32>
    %48 = vector.shape_cast %47 : vector<1xf32> to vector<1x1x1xf32>
    %49 = vector.extract %48[0, 0, 0] : f32 from vector<1x1x1xf32>
    %cst_25 = arith.constant 2.44140625E-4 : f32
    %50 = arith.mulf %49, %cst_25 : f32
    %cst_26 = arith.constant 9.99999993E-9 : f32
    %51 = arith.addf %50, %cst_26 : f32
    %52 = math.rsqrt %51 : f32
    %53 = vector.broadcast %52 : f32 to vector<32x1xf32>
    %54 = arith.mulf %13, %53 : vector<32x1xf32>
    %55 = vector.broadcast %54 : vector<32x1xf32> to vector<32x128xf32>
    %56 = arith.mulf %44, %55 : vector<32x128xf32>
    %57 = vector.broadcast %14 : vector<32x1xf32> to vector<32x128xf32>
    %58 = arith.addf %56, %57 : vector<32x128xf32>
    %c0_27 = arith.constant 0 : index
    %c0_28 = arith.constant 0 : index
    %59 = vector.load %arg10[%c0_27, %c0_28] : memref<32x256xf32, #tpu.memory_space<vmem>>, vector<32x128xf32>
    tpu.vector_store %arg10[%c0_27, %c0_28], %58 {strides = array<i32>} : memref<32x256xf32, #tpu.memory_space<vmem>>, vector<32x128xf32>,
    %60 = vector.extract_strided_slice %28 {offsets = [0, 128], sizes = [32, 128], strides = [1, 1]} : vector<32x256xf32> to vector<32x128xf32>
    %61 = vector.extract_strided_slice %27 {offsets = [0, 1], sizes = [32, 1], strides = [1, 1]} : vector<32x2xf32> to vector<32x1xf32>
    %62 = vector.broadcast %61 : vector<32x1xf32> to vector<32x128xf32>
    %63 = arith.addf %60, %62 : vector<32x128xf32>
    %cst_29 = arith.constant 0.000000e+00 : f32
    %64 = vector.broadcast %cst_29 : f32 to vector<32x128xf32>
    %65 = arith.cmpf ogt, %63, %64 : vector<32x128xf32>
    %66 = vector.broadcast %18 : vector<32x1xf32> to vector<32x128xf32>
    %67 = arith.mulf %66, %63 : vector<32x128xf32>
    %68 = arith.select %65, %63, %67 : vector<32x128xi1>, vector<32x128xf32>
    %69 = vector.shape_cast %68 : vector<32x128xf32> to vector<1x32x128xf32>
    %cst_30 = arith.constant dense<0.000000e+00> : vector<1xf32>
    %70 = vector.multi_reduction <add>, %69, %cst_30 [1, 2] : vector<1x32x128xf32> to vector<1xf32>
    %71 = vector.shape_cast %70 : vector<1xf32> to vector<1x1x1xf32>
    %72 = vector.extract %71[0, 0, 0] : f32 from vector<1x1x1xf32>
    %cst_31 = arith.constant 2.44140625E-4 : f32
    %73 = arith.mulf %72, %cst_31 : f32
    %74 = vector.broadcast %73 : f32 to vector<32x128xf32>
    %75 = arith.subf %68, %74 : vector<32x128xf32>
    %76 = arith.mulf %75, %75 : vector<32x128xf32>
    %77 = vector.shape_cast %76 : vector<32x128xf32> to vector<1x32x128xf32>
    %cst_32 = arith.constant dense<0.000000e+00> : vector<1xf32>
    %78 = vector.multi_reduction <add>, %77, %cst_32 [1, 2] : vector<1x32x128xf32> to vector<1xf32>
    %79 = vector.shape_cast %78 : vector<1xf32> to vector<1x1x1xf32>
    %80 = vector.extract %79[0, 0, 0] : f32 from vector<1x1x1xf32>
    %cst_33 = arith.constant 2.44140625E-4 : f32
    %81 = arith.mulf %80, %cst_33 : f32
    %cst_34 = arith.constant 9.99999993E-9 : f32
    %82 = arith.addf %81, %cst_34 : f32
    %83 = math.rsqrt %82 : f32
    %84 = vector.broadcast %83 : f32 to vector<32x1xf32>
    %85 = arith.mulf %13, %84 : vector<32x1xf32>
    %86 = vector.broadcast %85 : vector<32x1xf32> to vector<32x128xf32>
    %87 = arith.mulf %75, %86 : vector<32x128xf32>
    %88 = vector.broadcast %14 : vector<32x1xf32> to vector<32x128xf32>
    %89 = arith.addf %87, %88 : vector<32x128xf32>
    %c0_35 = arith.constant 0 : index
    %c128 = arith.constant 128 : index
    %90 = vector.load %arg10[%c0_35, %c128] : memref<32x256xf32, #tpu.memory_space<vmem>>, vector<32x128xf32>
    tpu.vector_store %arg10[%c0_35, %c128], %89 {strides = array<i32>} : memref<32x256xf32, #tpu.memory_space<vmem>>, vector<32x128xf32>,
    %91 = tpu.iota {dimensions = array<i32: 1>} : vector<1x256xi32>
    %c128_i32 = arith.constant 128 : i32
    %c0_i32_36 = arith.constant 0 : i32
    %92 = arith.cmpi eq, %c128_i32, %c0_i32_36 : i32
    %c1_i32 = arith.constant 1 : i32
    %93 = arith.select %92, %c1_i32, %c128_i32 : i32
    %94 = vector.broadcast %93 : i32 to vector<1x256xi32>
    %95 = arith.remsi %91, %94 : vector<1x256xi32>
    %c0_i32_37 = arith.constant 0 : i32
    %96 = vector.broadcast %c0_i32_37 : i32 to vector<1x256xi32>
    %97 = arith.cmpi ne, %95, %96 : vector<1x256xi32>
    %c0_i32_38 = arith.constant 0 : i32
    %98 = vector.broadcast %c0_i32_38 : i32 to vector<1x256xi32>
    %99 = arith.cmpi slt, %95, %98 : vector<1x256xi32>
    %c0_i32_39 = arith.constant 0 : i32
    %100 = arith.cmpi slt, %93, %c0_i32_39 : i32
    %101 = vector.broadcast %100 : i1 to vector<1x256xi1>
    %102 = vector.broadcast %101 : vector<1x256xi1> to vector<1x256xi1>
    %103 = arith.xori %99, %102 : vector<1x256xi1>
    %104 = arith.andi %103, %97 : vector<1x256xi1>
    %105 = vector.broadcast %93 : i32 to vector<1x256xi32>
    %106 = arith.addi %95, %105 : vector<1x256xi32>
    %107 = arith.select %104, %106, %95 : vector<1x256xi1>, vector<1x256xi32>
    %c0_40 = arith.constant 0 : index
    %c0_41 = arith.constant 0 : index
    %108 = vector.load %arg10[%c0_40, %c0_41] : memref<32x256xf32, #tpu.memory_space<vmem>>, vector<32x256xf32>
    %c1_i32_42 = arith.constant 1 : i32
    %109 = arith.cmpi slt, %arg0, %c1_i32_42 : i32
    %110 = arith.extui %109 : i1 to i32
    %c0_i32_43 = arith.constant 0 : i32
    %111 = arith.cmpi ne, %110, %c0_i32_43 : i32
    %112 = scf.if %111 -> (vector<32x256xf32>) {
      %176 = vector.extract_strided_slice %7 {offsets = [0, 1], sizes = [32, 1], strides = [1, 1]} : vector<32x3xf32> to vector<32x1xf32>
      %177 = vector.broadcast %176 : vector<32x1xf32> to vector<32x256xf32>
      %178 = arith.mulf %177, %108 : vector<32x256xf32>
      %c1_i32_61 = arith.constant 1 : i32
      %179 = tpu.dynamic_rotate %108 by %c1_i32_61 dim 1 : vector<32x256xf32>, i32 -> vector<32x256xf32>
      %c-1_i32 = arith.constant -1 : i32
      %180 = vector.broadcast %c-1_i32 : i32 to vector<1x256xi32>
      %181 = arith.addi %107, %180 : vector<1x256xi32>
      %c0_i32_62 = arith.constant 0 : i32
      %182 = vector.broadcast %c0_i32_62 : i32 to vector<1x256xi32>
      %183 = arith.cmpi sge, %181, %182 : vector<1x256xi32>
      %c-1_i32_63 = arith.constant -1 : i32
      %184 = vector.broadcast %c-1_i32_63 : i32 to vector<1x256xi32>
      %185 = arith.addi %107, %184 : vector<1x256xi32>
      %c128_i32_64 = arith.constant 128 : i32
      %186 = vector.broadcast %c128_i32_64 : i32 to vector<1x256xi32>
      %187 = arith.cmpi slt, %185, %186 : vector<1x256xi32>
      %188 = arith.andi %183, %187 : vector<1x256xi1>
      %189 = vector.extract_strided_slice %7 {offsets = [0, 0], sizes = [32, 1], strides = [1, 1]} : vector<32x3xf32> to vector<32x1xf32>
      %cst_65 = arith.constant 0.000000e+00 : f32
      %190 = vector.shape_cast %188 : vector<1x256xi1> to vector<1x256xi1>
      %191 = vector.broadcast %190 : vector<1x256xi1> to vector<32x256xi1>
      %192 = vector.broadcast %cst_65 : f32 to vector<32x256xf32>
      %193 = arith.select %191, %179, %192 : vector<32x256xi1>, vector<32x256xf32>
      %194 = vector.broadcast %189 : vector<32x1xf32> to vector<32x256xf32>
      %195 = arith.mulf %194, %193 : vector<32x256xf32>
      %196 = arith.addf %178, %195 : vector<32x256xf32>
      %c255_i32 = arith.constant 255 : i32
      %197 = tpu.dynamic_rotate %108 by %c255_i32 dim 1 : vector<32x256xf32>, i32 -> vector<32x256xf32>
      %c1_i32_66 = arith.constant 1 : i32
      %198 = vector.broadcast %c1_i32_66 : i32 to vector<1x256xi32>
      %199 = arith.addi %107, %198 : vector<1x256xi32>
      %c0_i32_67 = arith.constant 0 : i32
      %200 = vector.broadcast %c0_i32_67 : i32 to vector<1x256xi32>
      %201 = arith.cmpi sge, %199, %200 : vector<1x256xi32>
      %c1_i32_68 = arith.constant 1 : i32
      %202 = vector.broadcast %c1_i32_68 : i32 to vector<1x256xi32>
      %203 = arith.addi %107, %202 : vector<1x256xi32>
      %c128_i32_69 = arith.constant 128 : i32
      %204 = vector.broadcast %c128_i32_69 : i32 to vector<1x256xi32>
      %205 = arith.cmpi slt, %203, %204 : vector<1x256xi32>
      %206 = arith.andi %201, %205 : vector<1x256xi1>
      %207 = vector.extract_strided_slice %7 {offsets = [0, 2], sizes = [32, 1], strides = [1, 1]} : vector<32x3xf32> to vector<32x1xf32>
      %cst_70 = arith.constant 0.000000e+00 : f32
      %208 = vector.shape_cast %206 : vector<1x256xi1> to vector<1x256xi1>
      %209 = vector.broadcast %208 : vector<1x256xi1> to vector<32x256xi1>
      %210 = vector.broadcast %cst_70 : f32 to vector<32x256xf32>
      %211 = arith.select %209, %197, %210 : vector<32x256xi1>, vector<32x256xf32>
      %212 = vector.broadcast %207 : vector<32x1xf32> to vector<32x256xf32>
      %213 = arith.mulf %212, %211 : vector<32x256xf32>
      %214 = arith.addf %196, %213 : vector<32x256xf32>
      scf.yield %214 : vector<32x256xf32>
    } else {
      %c2_i32 = arith.constant 2 : i32
      %176 = arith.cmpi slt, %arg0, %c2_i32 : i32
      %177 = arith.extui %176 : i1 to i32
      %c0_i32_61 = arith.constant 0 : i32
      %178 = arith.cmpi ne, %177, %c0_i32_61 : i32
      %179 = scf.if %178 -> (vector<32x256xf32>) {
        %180 = vector.extract_strided_slice %7 {offsets = [0, 1], sizes = [32, 1], strides = [1, 1]} : vector<32x3xf32> to vector<32x1xf32>
        %181 = vector.broadcast %180 : vector<32x1xf32> to vector<32x256xf32>
        %182 = arith.mulf %181, %108 : vector<32x256xf32>
        %c2_i32_62 = arith.constant 2 : i32
        %183 = tpu.dynamic_rotate %108 by %c2_i32_62 dim 1 : vector<32x256xf32>, i32 -> vector<32x256xf32>
        %c-2_i32 = arith.constant -2 : i32
        %184 = vector.broadcast %c-2_i32 : i32 to vector<1x256xi32>
        %185 = arith.addi %107, %184 : vector<1x256xi32>
        %c0_i32_63 = arith.constant 0 : i32
        %186 = vector.broadcast %c0_i32_63 : i32 to vector<1x256xi32>
        %187 = arith.cmpi sge, %185, %186 : vector<1x256xi32>
        %c-2_i32_64 = arith.constant -2 : i32
        %188 = vector.broadcast %c-2_i32_64 : i32 to vector<1x256xi32>
        %189 = arith.addi %107, %188 : vector<1x256xi32>
        %c128_i32_65 = arith.constant 128 : i32
        %190 = vector.broadcast %c128_i32_65 : i32 to vector<1x256xi32>
        %191 = arith.cmpi slt, %189, %190 : vector<1x256xi32>
        %192 = arith.andi %187, %191 : vector<1x256xi1>
        %193 = vector.extract_strided_slice %7 {offsets = [0, 0], sizes = [32, 1], strides = [1, 1]} : vector<32x3xf32> to vector<32x1xf32>
        %cst_66 = arith.constant 0.000000e+00 : f32
        %194 = vector.shape_cast %192 : vector<1x256xi1> to vector<1x256xi1>
        %195 = vector.broadcast %194 : vector<1x256xi1> to vector<32x256xi1>
        %196 = vector.broadcast %cst_66 : f32 to vector<32x256xf32>
        %197 = arith.select %195, %183, %196 : vector<32x256xi1>, vector<32x256xf32>
        %198 = vector.broadcast %193 : vector<32x1xf32> to vector<32x256xf32>
        %199 = arith.mulf %198, %197 : vector<32x256xf32>
        %200 = arith.addf %182, %199 : vector<32x256xf32>
        %c254_i32 = arith.constant 254 : i32
        %201 = tpu.dynamic_rotate %108 by %c254_i32 dim 1 : vector<32x256xf32>, i32 -> vector<32x256xf32>
        %c2_i32_67 = arith.constant 2 : i32
        %202 = vector.broadcast %c2_i32_67 : i32 to vector<1x256xi32>
        %203 = arith.addi %107, %202 : vector<1x256xi32>
        %c0_i32_68 = arith.constant 0 : i32
        %204 = vector.broadcast %c0_i32_68 : i32 to vector<1x256xi32>
        %205 = arith.cmpi sge, %203, %204 : vector<1x256xi32>
        %c2_i32_69 = arith.constant 2 : i32
        %206 = vector.broadcast %c2_i32_69 : i32 to vector<1x256xi32>
        %207 = arith.addi %107, %206 : vector<1x256xi32>
        %c128_i32_70 = arith.constant 128 : i32
        %208 = vector.broadcast %c128_i32_70 : i32 to vector<1x256xi32>
        %209 = arith.cmpi slt, %207, %208 : vector<1x256xi32>
        %210 = arith.andi %205, %209 : vector<1x256xi1>
        %211 = vector.extract_strided_slice %7 {offsets = [0, 2], sizes = [32, 1], strides = [1, 1]} : vector<32x3xf32> to vector<32x1xf32>
        %cst_71 = arith.constant 0.000000e+00 : f32
        %212 = vector.shape_cast %210 : vector<1x256xi1> to vector<1x256xi1>
        %213 = vector.broadcast %212 : vector<1x256xi1> to vector<32x256xi1>
        %214 = vector.broadcast %cst_71 : f32 to vector<32x256xf32>
        %215 = arith.select %213, %201, %214 : vector<32x256xi1>, vector<32x256xf32>
        %216 = vector.broadcast %211 : vector<32x1xf32> to vector<32x256xf32>
        %217 = arith.mulf %216, %215 : vector<32x256xf32>
        %218 = arith.addf %200, %217 : vector<32x256xf32>
        scf.yield %218 : vector<32x256xf32>
      } else {
        %180 = vector.extract_strided_slice %7 {offsets = [0, 1], sizes = [32, 1], strides = [1, 1]} : vector<32x3xf32> to vector<32x1xf32>
        %181 = vector.broadcast %180 : vector<32x1xf32> to vector<32x256xf32>
        %182 = arith.mulf %181, %108 : vector<32x256xf32>
        %c4_i32 = arith.constant 4 : i32
        %183 = tpu.dynamic_rotate %108 by %c4_i32 dim 1 : vector<32x256xf32>, i32 -> vector<32x256xf32>
        %c-4_i32 = arith.constant -4 : i32
        %184 = vector.broadcast %c-4_i32 : i32 to vector<1x256xi32>
        %185 = arith.addi %107, %184 : vector<1x256xi32>
        %c0_i32_62 = arith.constant 0 : i32
        %186 = vector.broadcast %c0_i32_62 : i32 to vector<1x256xi32>
        %187 = arith.cmpi sge, %185, %186 : vector<1x256xi32>
        %c-4_i32_63 = arith.constant -4 : i32
        %188 = vector.broadcast %c-4_i32_63 : i32 to vector<1x256xi32>
        %189 = arith.addi %107, %188 : vector<1x256xi32>
        %c128_i32_64 = arith.constant 128 : i32
        %190 = vector.broadcast %c128_i32_64 : i32 to vector<1x256xi32>
        %191 = arith.cmpi slt, %189, %190 : vector<1x256xi32>
        %192 = arith.andi %187, %191 : vector<1x256xi1>
        %193 = vector.extract_strided_slice %7 {offsets = [0, 0], sizes = [32, 1], strides = [1, 1]} : vector<32x3xf32> to vector<32x1xf32>
        %cst_65 = arith.constant 0.000000e+00 : f32
        %194 = vector.shape_cast %192 : vector<1x256xi1> to vector<1x256xi1>
        %195 = vector.broadcast %194 : vector<1x256xi1> to vector<32x256xi1>
        %196 = vector.broadcast %cst_65 : f32 to vector<32x256xf32>
        %197 = arith.select %195, %183, %196 : vector<32x256xi1>, vector<32x256xf32>
        %198 = vector.broadcast %193 : vector<32x1xf32> to vector<32x256xf32>
        %199 = arith.mulf %198, %197 : vector<32x256xf32>
        %200 = arith.addf %182, %199 : vector<32x256xf32>
        %c252_i32 = arith.constant 252 : i32
        %201 = tpu.dynamic_rotate %108 by %c252_i32 dim 1 : vector<32x256xf32>, i32 -> vector<32x256xf32>
        %c4_i32_66 = arith.constant 4 : i32
        %202 = vector.broadcast %c4_i32_66 : i32 to vector<1x256xi32>
        %203 = arith.addi %107, %202 : vector<1x256xi32>
        %c0_i32_67 = arith.constant 0 : i32
        %204 = vector.broadcast %c0_i32_67 : i32 to vector<1x256xi32>
        %205 = arith.cmpi sge, %203, %204 : vector<1x256xi32>
        %c4_i32_68 = arith.constant 4 : i32
        %206 = vector.broadcast %c4_i32_68 : i32 to vector<1x256xi32>
        %207 = arith.addi %107, %206 : vector<1x256xi32>
        %c128_i32_69 = arith.constant 128 : i32
        %208 = vector.broadcast %c128_i32_69 : i32 to vector<1x256xi32>
        %209 = arith.cmpi slt, %207, %208 : vector<1x256xi32>
        %210 = arith.andi %205, %209 : vector<1x256xi1>
        %211 = vector.extract_strided_slice %7 {offsets = [0, 2], sizes = [32, 1], strides = [1, 1]} : vector<32x3xf32> to vector<32x1xf32>
        %cst_70 = arith.constant 0.000000e+00 : f32
        %212 = vector.shape_cast %210 : vector<1x256xi1> to vector<1x256xi1>
        %213 = vector.broadcast %212 : vector<1x256xi1> to vector<32x256xi1>
        %214 = vector.broadcast %cst_70 : f32 to vector<32x256xf32>
        %215 = arith.select %213, %201, %214 : vector<32x256xi1>, vector<32x256xf32>
        %216 = vector.broadcast %211 : vector<32x1xf32> to vector<32x256xf32>
        %217 = arith.mulf %216, %215 : vector<32x256xf32>
        %218 = arith.addf %200, %217 : vector<32x256xf32>
        scf.yield %218 : vector<32x256xf32>
      }
      scf.yield %179 : vector<32x256xf32>
    }
    %113 = vector.broadcast %15 : vector<32x1xf32> to vector<32x256xf32>
    %114 = arith.addf %112, %113 : vector<32x256xf32>
    %cst_44 = arith.constant 0.000000e+00 : f32
    %115 = vector.broadcast %cst_44 : f32 to vector<32x256xf32>
    %116 = arith.cmpf ogt, %114, %115 : vector<32x256xf32>
    %117 = vector.broadcast %19 : vector<32x1xf32> to vector<32x256xf32>
    %118 = arith.mulf %117, %114 : vector<32x256xf32>
    %119 = arith.select %116, %114, %118 : vector<32x256xi1>, vector<32x256xf32>
    %120 = vector.extract_strided_slice %119 {offsets = [0, 0], sizes = [32, 128], strides = [1, 1]} : vector<32x256xf32> to vector<32x128xf32>
    %121 = vector.shape_cast %120 : vector<32x128xf32> to vector<1x32x128xf32>
    %cst_45 = arith.constant dense<0.000000e+00> : vector<1xf32>
    %122 = vector.multi_reduction <add>, %121, %cst_45 [1, 2] : vector<1x32x128xf32> to vector<1xf32>
    %123 = vector.shape_cast %122 : vector<1xf32> to vector<1x1x1xf32>
    %124 = vector.extract %123[0, 0, 0] : f32 from vector<1x1x1xf32>
    %cst_46 = arith.constant 2.44140625E-4 : f32
    %125 = arith.mulf %124, %cst_46 : f32
    %126 = vector.broadcast %125 : f32 to vector<32x128xf32>
    %127 = arith.subf %120, %126 : vector<32x128xf32>
    %128 = arith.mulf %127, %127 : vector<32x128xf32>
    %129 = vector.shape_cast %128 : vector<32x128xf32> to vector<1x32x128xf32>
    %cst_47 = arith.constant dense<0.000000e+00> : vector<1xf32>
    %130 = vector.multi_reduction <add>, %129, %cst_47 [1, 2] : vector<1x32x128xf32> to vector<1xf32>
    %131 = vector.shape_cast %130 : vector<1xf32> to vector<1x1x1xf32>
    %132 = vector.extract %131[0, 0, 0] : f32 from vector<1x1x1xf32>
    %cst_48 = arith.constant 2.44140625E-4 : f32
    %133 = arith.mulf %132, %cst_48 : f32
    %cst_49 = arith.constant 9.99999993E-9 : f32
    %134 = arith.addf %133, %cst_49 : f32
    %135 = math.rsqrt %134 : f32
    %136 = vector.broadcast %135 : f32 to vector<32x1xf32>
    %137 = arith.mulf %16, %136 : vector<32x1xf32>
    %138 = vector.broadcast %137 : vector<32x1xf32> to vector<32x128xf32>
    %139 = arith.mulf %127, %138 : vector<32x128xf32>
    %140 = vector.broadcast %17 : vector<32x1xf32> to vector<32x128xf32>
    %141 = arith.addf %139, %140 : vector<32x128xf32>
    %cst_50 = arith.constant dense<0.000000e+00> : vector<16x128xf32>
    %142 = tpu.matmul %9, %141, %cst_50 {dimension_numbers = #tpu.dot_dimension_numbers<[1], [0], [0], [1], [0, 0, 1, 1], [], []>} : vector<16x32xf32>, vector<32x128xf32>, vector<16x128xf32> -> vector<16x128xf32>
    %143 = vector.broadcast %21 : vector<16x1xf32> to vector<16x128xf32>
    %144 = arith.addf %142, %143 : vector<16x128xf32>
    %145 = vector.extract_strided_slice %3 {offsets = [0, 0], sizes = [16, 128], strides = [1, 1]} : vector<16x256xf32> to vector<16x128xf32>
    %146 = arith.addf %144, %145 : vector<16x128xf32>
    %c0_51 = arith.constant 0 : index
    %c0_52 = arith.constant 0 : index
    %147 = vector.load %arg9[%c0_51, %c0_52] : memref<16x256xf32, #tpu.memory_space<vmem>>, vector<16x128xf32>
    tpu.vector_store %arg9[%c0_51, %c0_52], %146 {strides = array<i32>} : memref<16x256xf32, #tpu.memory_space<vmem>>, vector<16x128xf32>,
    %148 = vector.extract_strided_slice %119 {offsets = [0, 128], sizes = [32, 128], strides = [1, 1]} : vector<32x256xf32> to vector<32x128xf32>
    %149 = vector.shape_cast %148 : vector<32x128xf32> to vector<1x32x128xf32>
    %cst_53 = arith.constant dense<0.000000e+00> : vector<1xf32>
    %150 = vector.multi_reduction <add>, %149, %cst_53 [1, 2] : vector<1x32x128xf32> to vector<1xf32>
    %151 = vector.shape_cast %150 : vector<1xf32> to vector<1x1x1xf32>
    %152 = vector.extract %151[0, 0, 0] : f32 from vector<1x1x1xf32>
    %cst_54 = arith.constant 2.44140625E-4 : f32
    %153 = arith.mulf %152, %cst_54 : f32
    %154 = vector.broadcast %153 : f32 to vector<32x128xf32>
    %155 = arith.subf %148, %154 : vector<32x128xf32>
    %156 = arith.mulf %155, %155 : vector<32x128xf32>
    %157 = vector.shape_cast %156 : vector<32x128xf32> to vector<1x32x128xf32>
    %cst_55 = arith.constant dense<0.000000e+00> : vector<1xf32>
    %158 = vector.multi_reduction <add>, %157, %cst_55 [1, 2] : vector<1x32x128xf32> to vector<1xf32>
    %159 = vector.shape_cast %158 : vector<1xf32> to vector<1x1x1xf32>
    %160 = vector.extract %159[0, 0, 0] : f32 from vector<1x1x1xf32>
    %cst_56 = arith.constant 2.44140625E-4 : f32
    %161 = arith.mulf %160, %cst_56 : f32
    %cst_57 = arith.constant 9.99999993E-9 : f32
    %162 = arith.addf %161, %cst_57 : f32
    %163 = math.rsqrt %162 : f32
    %164 = vector.broadcast %163 : f32 to vector<32x1xf32>
    %165 = arith.mulf %16, %164 : vector<32x1xf32>
    %166 = vector.broadcast %165 : vector<32x1xf32> to vector<32x128xf32>
    %167 = arith.mulf %155, %166 : vector<32x128xf32>
    %168 = vector.broadcast %17 : vector<32x1xf32> to vector<32x128xf32>
    %169 = arith.addf %167, %168 : vector<32x128xf32>
    %cst_58 = arith.constant dense<0.000000e+00> : vector<16x128xf32>
    %170 = tpu.matmul %9, %169, %cst_58 {dimension_numbers = #tpu.dot_dimension_numbers<[1], [0], [0], [1], [0, 0, 1, 1], [], []>} : vector<16x32xf32>, vector<32x128xf32>, vector<16x128xf32> -> vector<16x128xf32>
    %171 = vector.broadcast %21 : vector<16x1xf32> to vector<16x128xf32>
    %172 = arith.addf %170, %171 : vector<16x128xf32>
    %173 = vector.extract_strided_slice %3 {offsets = [0, 128], sizes = [16, 128], strides = [1, 1]} : vector<16x256xf32> to vector<16x128xf32>
    %174 = arith.addf %172, %173 : vector<16x128xf32>
    %c0_59 = arith.constant 0 : index
    %c128_60 = arith.constant 128 : index
    %175 = vector.load %arg9[%c0_59, %c128_60] : memref<16x256xf32, #tpu.memory_space<vmem>>, vector<16x128xf32>
    tpu.vector_store %arg9[%c0_59, %c128_60], %174 {strides = array<i32>} : memref<16x256xf32, #tpu.memory_space<vmem>>, vector<16x128xf32>,
    return
  }
  func.func @transform_0(%arg0: i32) -> (i32, i32) {
    %c0_i32 = arith.constant 0 : i32
    %c0_i32_0 = arith.constant 0 : i32
    %c0_i32_1 = arith.constant 0 : i32
    return %c0_i32, %c0_i32_0 : i32, i32
  }
  func.func @transform_1(%arg0: i32) -> (i32, i32) {
    %c0_i32 = arith.constant 0 : i32
    %c0_i32_0 = arith.constant 0 : i32
    %c0_i32_1 = arith.constant 0 : i32
    return %c0_i32, %c0_i32_0 : i32, i32
  }
  func.func @transform_2(%arg0: i32) -> (i32, i32) {
    %c0_i32 = arith.constant 0 : i32
    %c0_i32_0 = arith.constant 0 : i32
    %c0_i32_1 = arith.constant 0 : i32
    return %c0_i32, %c0_i32_0 : i32, i32
  }
  func.func @transform_3(%arg0: i32) -> (i32, i32, i32) {
    %c0_i32 = arith.constant 0 : i32
    %c0_i32_0 = arith.constant 0 : i32
    %c0_i32_1 = arith.constant 0 : i32
    return %arg0, %c0_i32, %c0_i32_0 : i32, i32, i32
  }
  func.func @transform_4(%arg0: i32) -> (i32, i32, i32) {
    %c0_i32 = arith.constant 0 : i32
    %c0_i32_0 = arith.constant 0 : i32
    %c0_i32_1 = arith.constant 0 : i32
    return %arg0, %c0_i32, %c0_i32_0 : i32, i32, i32
  }
  func.func @transform_5(%arg0: i32) -> (i32, i32, i32) {
    %c0_i32 = arith.constant 0 : i32
    %c0_i32_0 = arith.constant 0 : i32
    %c0_i32_1 = arith.constant 0 : i32
    return %arg0, %c0_i32, %c0_i32_0 : i32, i32, i32
  }
  func.func @transform_6(%arg0: i32) -> (i32, i32, i32) {
    %c0_i32 = arith.constant 0 : i32
    %c0_i32_0 = arith.constant 0 : i32
    %c0_i32_1 = arith.constant 0 : i32
    return %arg0, %c0_i32, %c0_i32_0 : i32, i32, i32
  }
  func.func @transform_7(%arg0: i32) -> (i32, i32, i32) {
    %c0_i32 = arith.constant 0 : i32
    %c0_i32_0 = arith.constant 0 : i32
    %c0_i32_1 = arith.constant 0 : i32
    return %arg0, %c0_i32, %c0_i32_0 : i32, i32, i32
  }
  func.func @transform_8(%arg0: i32) -> (i32, i32) {
    %c0_i32 = arith.constant 0 : i32
    %c0_i32_0 = arith.constant 0 : i32
    %c0_i32_1 = arith.constant 0 : i32
    return %c0_i32, %c0_i32_0 : i32, i32
  }
}

</mosaic_0001>

<bundles_post_ra>
// kernel: tpu_custom_call.1
= control target key start
LH: loop header
LB: loop body
LE: loop exit
PB: predicated region body
PF: predicated region fallthrough
CT: control target
= control target key end

     0   :  { %13 = vsyncpa [#allocation5], 0  ;;  %s2887_s27 = smov 0   ;;  %s3795_s0 = inlined_call_operand.vmem [shape: f32[16,256], index: 0, kind: input, shape index: {}]   ;;  %s3796_s1 = inlined_call_operand.vmem [shape: f32[8,2], index: 1, kind: input, shape index: {}]   ;;  %s3797_s2 = inlined_call_operand.vmem [shape: f32[32,8], index: 2, kind: input, shape index: {}]   ;;  %s3798_s3 = inlined_call_operand.vmem [shape: f32[3,32,16], index: 3, kind: input, shape index: {}]   ;;  %s3799_s4 = inlined_call_operand.vmem [shape: f32[3,32,3], index: 4, kind: input, shape index: {}]   ;;  %s3800_s5 = inlined_call_operand.vmem [shape: f32[3,16,32], index: 5, kind: input, shape index: {}]   ;;  %s3801_s6 = inlined_call_operand.vmem [shape: f32[3,32,8], index: 6, kind: input, shape index: {}]   ;;  %s3802_s7 = inlined_call_operand.vmem [shape: f32[3,16,1], index: 7, kind: input, shape index: {}]   ;;  %s3803_s8 = inlined_call_operand.hbm [shape: f32[16,256], index: 8, kind: output, shape index: {}]  }
   0x1 LB: > { %s2893_s28 = sadd.s32 4294967295, %s2685_s27   ;;  %p2026_p0 = scmp.ge.s32.totalorder %s2685_s27, 1  ;;  %s2685_s27 = sphi %s2887_s27, %s19_s27  }
   0x2   : > { %p298_p1 = scmp.lt.s32.totalorder %s2685_s27, 4 }
   0x4   : > { %p299_p2 = pnand %p2026_p0, %p298_p1 }
   0x6   : > { %302 = sbr.rel (%p299_p2) target bundleno = 3275 (0xccb), region = 52 }
   0xd   : > { %p347_p3 = scmp.lt.s32.totalorder %s2893_s28, 2  ;;  %p372_p4 = scmp.eq.s32.totalorder %s2893_s28, 0 }
   0xe   : > { %p2037_p5 = scmp.ne.s32.totalorder %s2893_s28, 0 }
   0xf   : > { %s348_s29 = scalar_select %p347_p3, %s2893_s28, 2 }
  0x10   : > { %375 = sbr.rel (%p2037_p5) target bundleno = 235 (0xeb), region = 56  ;;  %v376_v0 = vld [vmem:[%s3795_s0] sm:$0xff] (!%p2037_p5)  ;;  %v377_v1 = vld [vmem:[%s3795_s0 + $0x8] sm:$0xff] (!%p2037_p5)  ;;  %v378_v2 = vld [vmem:[%s3795_s0 + $0x10] sm:$0xff] (!%p2037_p5)  ;;  %vm389_vm0 = vcmask (!%p2037_p5), 64512   ;;  %vm487_vm1 = vcmask (!%p2037_p5), 15360  }
  0x11   : > { %s2056_s30 = sshll.u32 %s348_s29, 5  ;;  %s2058_s9 = sshll.u32 %s348_s29, 4  ;;  %v379_v3 = vld [vmem:[%s3795_s0 + $0x18] sm:$0xff] (!%p2037_p5)  ;;  %380 = vst [vmem:[#allocation4] sm:$0xff] (!%p2037_p5), %v376_v0  ;;  %381 = vst [vmem:[#allocation4 + $0x8] sm:$0xff] (!%p2037_p5), %v377_v1  ;;  %v388_v4 = vld [vmem:[%s3796_s1] sm:$0xff] (!%p2037_p5) }
  0x12   : > { %s2905_s12 = scalar_lea.vmem %s3798_s3, %s2056_s30  ;;  %s2910_s15 = scalar_lea.vmem %s3799_s4, %s2056_s30  ;;  %382 = vst [vmem:[#allocation4 + $0x10] sm:$0xff] (!%p2037_p5), %v378_v2  ;;  %v384_v5 = vld [vmem:[%s3797_s2] sm:$0xff] (!%p2037_p5)  ;;  %383 = vst [vmem:[#allocation4 + $0x18] sm:$0xff] (!%p2037_p5), %v379_v3  ;;  %2078 = vmatprep.subr.mxu0 (!%p2037_p5), %v388_v4  ;;  %2128 = vmatprep.subr.mxu1 (!%p2037_p5), %v388_v4  ;;  %v386_v6 = vld [vmem:[%s3797_s2 + $0x10] sm:$0xff] (!%p2037_p5) }
  0x13   : > { %s2915_s18 = scalar_lea.vmem %s3800_s5, %s2058_s9  ;;  %s2920_s21 = scalar_lea.vmem %s3801_s6, %s2056_s30  ;;  %v385_v7 = vld [vmem:[%s3797_s2 + $0x8] sm:$0xff] (!%p2037_p5)  ;;  %v387_v8 = vld [vmem:[%s3797_s2 + $0x18] sm:$0xff] (!%p2037_p5)  ;;  %2079 = vmatpush3.msra.mxu0 (!%p2037_p5), %v388_v4  ;;  %2129 = vmatpush3.msra.mxu1 (!%p2037_p5), %v388_v4 }
  0x14   : > { %s2925_s24 = scalar_lea.vmem %s3802_s7, %s2058_s9  ;;  %2080 = vmatprep.mubr.msk.f32.mxu0 (!%p2037_p5), %vm389_vm0, %v384_v5  ;;  %2083 = vmatprep.mubr.msk.f32.mxu1 (!%p2037_p5), %vm389_vm0, %v386_v6 }
  0x15   : > { %2081 = vmatmul.mubr.msk.f32.vlgmr.msra.gmra.mrb[0].mxu0 (!%p2037_p5), %vm389_vm0, %v385_v7  ;;  %2084 = vmatmul.mubr.msk.f32.vlgmr.msra.gmra.mrb[0].mxu1 (!%p2037_p5), %vm389_vm0, %v387_v8 }
  0xe8   : > { %v2082_v9 = vpop.f32.mrb[0].mxu0  ;;  %v2085_v10 = vpop.f32.mrb[0].mxu1 }
  0xe9   : > { %489 = vst.msk [vmem:[#allocation3 + $0x8] sm:$0xff] %vm487_vm1, %v2082_v9  ;;  %491 = vst.msk [vmem:[#allocation3 + $0x18] sm:$0xff] %vm487_vm1, %v2085_v10  ;;  %v468_v11 = vpop.f32.mrb[1].mxu0  ;;  %v478_v12 = vpop.f32.mrb[1].mxu1 }
  0xea   : > { %488 = vst.msk [vmem:[#allocation3] sm:$0xff] %vm487_vm1, %v468_v11  ;;  %490 = vst.msk [vmem:[#allocation3 + $0x10] sm:$0xff] %vm487_vm1, %v478_v12 }
  0xeb PF: > { %v2956_v13 = vld [vmem:[%s2920_s21 + $0x10] sm:$0xff]  ;;  %v2959_v14 = vld [vmem:[%s2920_s21] sm:$0xff]  ;;  %v3804_v15 = vmov 0   ;;  %v2964_v16 = vld [vmem:[%s2920_s21 + $0x18] sm:$0xff]  ;;  %v2816_v27 = vmov 0.0   ;;  %vm547_vm2 = vcmask 130048  }
  0xec   : > { %2452 = vset.pattern.permute.xlu1 %v3804_v15  ;;  %2451 = vset.pattern.permute.xlu0 %v3804_v15  ;;  %v2967_v17 = vld [vmem:[%s2920_s21 + $0x8] sm:$0xff]  ;;  %v2976_v20 = vld [vmem:[%s2910_s15] sm:$0xff]  ;;  %v2982_v22 = vld [vmem:[%s2910_s15 + $0x10] sm:$0xff]  ;;  %v2817_v34 = vmov 6   ;;  %v2818_v50 = vmov 1   ;;  %p936_p6 = scmp.lt.s32.totalorder %s2893_s28, 1 }
  0xed   : > { %v2969_v18 = vld [vmem:[#allocation4 + $0x8] sm:$0xff]  ;;  %v2971_v19 = vld [vmem:[#allocation4 + $0x18] sm:$0xff]  ;;  %535 = vperm.xlu1 %2452, %v2956_v13   ;;  %525 = vperm.xlu0 %2451, %v2959_v14   ;;  %v2990_v25 = vld [vmem:[%s2915_s18] sm:$0xff]  ;;  %p2046_p7 = scmp.ge.s32.totalorder %s2893_s28, 1 }
  0xee   : > { %3809 = vst [vmem:[#allocation7_spill] sm:$0xff] %v2969_v18  ;;  %3810 = vst [vmem:[#allocation8_spill] sm:$0xff] %v2971_v19  ;;  %v2979_v21 = vld [vmem:[%s2910_s15 + $0x8] sm:$0xff]  ;;  %v2108_v23 = vpack.c.bf16 %v2971_v19, %v2969_v18  ;;  %v2987_v24 = vld [vmem:[%s2910_s15 + $0x18] sm:$0xff]  ;;  %624 = vmatprep.mubr.f32.mxu0 %v2816_v27  ;;  %s2472_s15 = scalar_select %p372_p4, 255, 0 }
  0xef   : > { %v2993_v26 = vld [vmem:[%s2915_s18 + $0x8] sm:$0xff]  ;;  %v2996_v28 = vld [vmem:[%s2925_s24] sm:$0xff]  ;;  %v3003_v31 = vld [vmem:[#allocation4 + $0x10] sm:$0xff]  ;;  %s2823_s19 = smov (!%p2046_p7), 1   ;;  %s2824_s20 = smov (!%p2046_p7), 127  }
  0xf0   : > { %v2999_v29 = vld [vmem:[%s2925_s24 + $0x8] sm:$0xff]  ;;  %2109 = vmatprep.subr.bf16.mxu0 %v2108_v23  ;;  %v3001_v30 = vld [vmem:[#allocation4] sm:$0xff]  ;;  %v498_v36 = vld [vmem:[%s2905_s12 + $0x10] sm:$0xff] }
  0xf1   : > { %3811 = vst [vmem:[#allocation9_spill] sm:$0xff] %v3001_v30  ;;  %540 = vperm.xlu1 %2452, %v2964_v16   ;;  %530 = vperm.xlu0 %2451, %v2967_v17   ;;  %v2110_v32 = vpack.c.bf16 %v3003_v31, %v3001_v30  ;;  %v496_v33 = vld [vmem:[%s2905_s12] sm:$0xff]  ;;  %v497_v35 = vld [vmem:[%s2905_s12 + $0x8] sm:$0xff]  ;;  %v499_v37 = vld [vmem:[%s2905_s12 + $0x18] sm:$0xff] }
  0xf2   : > { %v2473_v38 = vld [vmem:[#allocation3] sm:%s2472_s15]  ;;  %v2470_v39 = vld [vmem:[#allocation3 + $0x10] sm:%s2472_s15]  ;;  %v2479_v43 = vld [vmem:[#allocation3 + $0x8] sm:%s2472_s15] }
  0xf3   : > { %2111 = vmatpush1.bf16.msra.mxu0 %v2110_v32  ;;  %v2476_v47 = vld [vmem:[#allocation3 + $0x18] sm:%s2472_s15] }
  0xf5   : > { %2454 = vset.pattern.permute.xlu0 %v2817_v34  ;;  %2453 = vset.pattern.permute.xlu1 %v2817_v34 }
  0xf6   : > { %2042 = vmatmul.mubr.msk.f32.vlgmr.msra.gmra.mrb[0].mxu0 %vm547_vm2, %v496_v33  ;;  %682 = vperm.xlu0 %2454, %v2967_v17  }
  0xf7   : > { %630 = vmatprep.mubr.f32.mxu0 %v2816_v27  ;;  %678 = vperm.xlu1 %2453, %v2959_v14  }
  0xfa   : > { %2043 = vmatmul.mubr.msk.f32.gmra.mrb[2].mxu0 %vm547_vm2, %v497_v35  ;;  %2455 = vset.pattern.permute.xlu0 %v3804_v15 }
  0xfb   : > { %636 = vmatprep.mubr.f32.mxu0 %v2816_v27  ;;  %2456 = vset.pattern.permute.xlu1 %v3804_v15 }
  0xfe   : > { %2044 = vmatmul.mubr.msk.f32.gmra.mrb[4].mxu0 %vm547_vm2, %v498_v36 }
  0xff   : > { %642 = vmatprep.mubr.f32.mxu0 %v2816_v27 }
 0x102   : > { %2045 = vmatmul.mubr.msk.f32.gmra.mrb[6].mxu0 %vm547_vm2, %v499_v37 }
 0x16c   : > { %v536_v40 = vpop.permute.xlu1 %535  ;;  %v526_v41 = vpop.permute.xlu0 %525 }
 0x16d   : > { %v543_v42 = vadd.f32 %v2473_v38, %v526_v41  ;;  %v545_v44 = vadd.f32 %v2470_v39, %v536_v40 }
 0x16f   : > { %651 = vperm.xlu0 %2455, %v543_v42  }
 0x170   : > { %v531_v45 = vpop.permute.xlu0 %530  ;;  %v541_v48 = vpop.permute.xlu1 %540 }
 0x171   : > { %v544_v46 = vadd.f32 %v2479_v43, %v531_v45  ;;  %v546_v49 = vadd.f32 %v2476_v47, %v541_v48 }
 0x173   : > { %661 = vperm.xlu0 %2455, %v545_v44   ;;  %656 = vperm.xlu1 %2456, %v544_v46  }
 0x175   : > { %v683_v59 = vpop.permute.xlu0 %682 }
 0x176   : > { %v679_v60 = vpop.permute.xlu1 %678 }
 0x177   : > { %2458 = vset.pattern.permute.xlu0 %v2817_v34  ;;  %666 = vperm.xlu1 %2456, %v546_v49  }
 0x178   : > { %690 = vperm.xlu0 %2458, %v2964_v16  }
 0x17b   : > { %2457 = vset.pattern.permute.xlu1 %v2817_v34 }
 0x17c   : > { %2459 = vset.pattern.permute.xlu0 %v2818_v50  ;;  %686 = vperm.xlu1 %2457, %v2956_v13  }
 0x17d   : > { %794 = vperm.xlu0 %2459, %v543_v42  }
 0x180   : > { %2460 = vset.pattern.permute.xlu1 %v2818_v50 }
 0x181   : > { %798 = vperm.xlu0 %2459, %v544_v46  }
 0x185   : > { %802 = vperm.xlu0 %2459, %v545_v44  }
 0x189   : > { %806 = vperm.xlu0 %2459, %v546_v49  }
 0x1c9   : > { %v626_v51 = vpop.f32.mrb[0].mxu0 }
 0x1ca   : > { %v628_v52 = vpop.f32.mrb[1].mxu0 }
 0x1cd   : > { %v632_v53 = vpop.f32.mrb[2].mxu0 }
 0x1ce   : > { %v634_v54 = vpop.f32.mrb[3].mxu0 }
 0x1d1   : > { %v638_v55 = vpop.f32.mrb[4].mxu0 }
 0x1d2   : > { %v640_v56 = vpop.f32.mrb[5].mxu0 }
 0x1d5   : > { %v644_v57 = vpop.f32.mrb[6].mxu0 }
 0x1d6   : > { %v646_v58 = vpop.f32.mrb[7].mxu0 }
 0x1ee   : > { %v652_v61 = vpop.permute.xlu0 %651 }
 0x1ef   : > { %v669_v1 = vadd.f32 %v652_v61, %v626_v51 }
 0x1f1   : > { %v693_v5 = vmul.f32 %v679_v60, %v669_v1  ;;  %vm673_vm4 = vcmp.gt.f32.partialorder %v669_v1, 0.0 }
 0x1f2   : > { %v657_v62 = vpop.permute.xlu1 %656  ;;  %v662_v0 = vpop.permute.xlu0 %661 }
 0x1f3   : > { %v670_v63 = vadd.f32 %v657_v62, %v632_v53  ;;  %v671_v7 = vadd.f32 %v662_v0, %v638_v55  ;;  %v697_v10 = vsel %vm673_vm4, %v669_v1, %v693_v5 }
 0x1f5   : > { %v694_v2 = vmul.f32 %v683_v59, %v670_v63  ;;  %vm674_vm3 = vcmp.gt.f32.partialorder %v670_v63, 0.0  ;;  %vm675_vm5 = vcmp.gt.f32.partialorder %v671_v7, 0.0 }
 0x1f6   : > { %v667_v3 = vpop.permute.xlu1 %666 }
 0x1f7   : > { %v691_v4 = vpop.permute.xlu0 %690  ;;  %v672_v6 = vadd.f32 %v667_v3, %v644_v57  ;;  %v698_v8 = vsel %vm674_vm3, %v670_v63, %v694_v2 }
 0x1f8   : > { %v701_v27 = vadd.f32 %v698_v8, %v697_v10 }
 0x1f9   : > { %v696_v11 = vmul.f32 %v691_v4, %v672_v6  ;;  %vm676_vm6 = vcmp.gt.f32.partialorder %v672_v6, 0.0 }
 0x1fb   : > { %v687_v9 = vpop.permute.xlu1 %686  ;;  %v700_v35 = vsel %vm676_vm6, %v672_v6, %v696_v11 }
 0x1fc   : > { %v695_v12 = vmul.f32 %v687_v9, %v671_v7  ;;  %v795_v23 = vpop.permute.xlu0 %794 }
 0x1fd   : > { %v809_v36 = vadd.f32 %v795_v23, %v628_v52 }
 0x1fe   : > { %v699_v32 = vsel %vm675_vm5, %v671_v7, %v695_v12 }
 0x1ff   : > { %v702_v33 = vadd.f32 %v701_v27, %v699_v32  ;;  %v817_v41 = vmul.f32 %v809_v36, %v679_v60  ;;  %vm813_vm8 = vcmp.gt.f32.partialorder %v809_v36, 0.0 }
 0x200   : > { %v799_v34 = vpop.permute.xlu0 %798 }
 0x201   : > { %v810_v37 = vadd.f32 %v799_v34, %v634_v54  ;;  %v703_v38 = vadd.f32 %v702_v33, %v700_v35  ;;  %v3029_v46 = vsel %vm813_vm8, %v809_v36, %v817_v41 }
 0x203   : > { %v818_v39 = vmul.f32 %v810_v37, %v683_v59  ;;  %704 = vadd.xlane.f32.xlu1 %v703_v38  ;;  %vm814_vm7 = vcmp.gt.f32.partialorder %v810_v37, 0.0 }
 0x204   : > { %v803_v40 = vpop.permute.xlu0 %802 }
 0x205   : > { %v811_v42 = vadd.f32 %v803_v40, %v640_v56  ;;  %v3027_v43 = vsel %vm814_vm7, %v810_v37, %v818_v39 }
 0x206   : > { %v825_v49 = vadd.f32 %v3027_v43, %v3029_v46 }
 0x207   : > { %vm815_vm9 = vcmp.gt.f32.partialorder %v811_v42, 0.0  ;;  %v819_v44 = vmul.f32 %v811_v42, %v687_v9 }
 0x208   : > { %v807_v45 = vpop.permute.xlu0 %806 }
 0x209   : > { %v812_v47 = vadd.f32 %v807_v45, %v646_v58  ;;  %v3031_v48 = vsel %vm815_vm9, %v811_v42, %v819_v44 }
 0x20a   : > { %v826_v52 = vadd.f32 %v825_v49, %v3031_v48 }
 0x20b   : > { %v820_v51 = vmul.f32 %v812_v47, %v691_v4  ;;  %vm816_vm10 = vcmp.gt.f32.partialorder %v812_v47, 0.0 }
 0x20d   : > { %v3036_v53 = vsel %vm816_vm10, %v812_v47, %v820_v51 }
 0x20e   : > { %v827_v54 = vadd.f32 %v826_v52, %v3036_v53 }
 0x210   : > { %828 = vadd.xlane.f32.xlu1 %v827_v54 }
 0x290   : > { %v705_v55 = vpop.xlane.xlu1 %704 }
 0x291   : > { %v706_v56 = vrot.slane %v705_v55, 4 }
 0x293   : > { %v707_v57 = vadd.f32 %v706_v56, %v705_v55 }
 0x295   : > { %v708_v59 = vrot.slane %v707_v57, 2 }
 0x297   : > { %v709_v60 = vadd.f32 %v708_v59, %v707_v57 }
 0x299   : > { %v710_v58 = vrot.slane %v709_v60, 1 }
 0x29b   : > { %v711_v61 = vadd.f32 %v710_v58, %v709_v60 }
 0x29d   : > { %2130 = vpush %v711_v61 }
 0x2ce   : > { %s2131_s12 = spop %2130 }
 0x2cf   : > { %s713_s18 = smul.f32 0.00024414063, %s2131_s12 }
 0x2d1   : > { %v714_v62 = vstv %s713_s18 }
 0x2d2   : > { %v3039_v63 = vsub.f32 %v697_v10, %v714_v62  ;;  %v3041_v0 = vsub.f32 %v698_v8, %v714_v62  ;;  %v3043_v1 = vsub.f32 %v699_v32, %v714_v62  ;;  %v3045_v2 = vsub.f32 %v700_v35, %v714_v62  ;;  %v829_v35 = vpop.xlane.xlu1 %828 }
 0x2d3   : > { %v2819_v10 = vmov 2   ;;  %v830_v36 = vrot.slane %v829_v35, 4 }
 0x2d4   : > { %v719_v3 = vmul.f32 %v3039_v63, %v3039_v63  ;;  %v720_v4 = vmul.f32 %v3041_v0, %v3041_v0  ;;  %v721_v5 = vmul.f32 %v3043_v1, %v3043_v1  ;;  %v722_v7 = vmul.f32 %v3045_v2, %v3045_v2  ;;  %2461 = vset.pattern.permute.xlu0 %v2819_v10 }
 0x2d5   : > { %v831_v37 = vadd.f32 %v830_v36, %v829_v35 }
 0x2d6   : > { %v723_v6 = vadd.f32 %v720_v4, %v719_v3 }
 0x2d7   : > { %v832_v38 = vrot.slane %v831_v37, 2 }
 0x2d8   : > { %v724_v9 = vadd.f32 %v723_v6, %v721_v5 }
 0x2d9   : > { %v833_v40 = vadd.f32 %v832_v38, %v831_v37 }
 0x2da   : > { %v725_v8 = vadd.f32 %v724_v9, %v722_v7 }
 0x2db   : > { %v834_v41 = vrot.slane %v833_v40, 1 }
 0x2dc   : > { %726 = vadd.xlane.f32.xlu0 %v725_v8 }
 0x2dd   : > { %v835_v44 = vadd.f32 %v834_v41, %v833_v40 }
 0x2f2   : > { %770 = vperm.xlu0 %2461, %v2959_v14  }
 0x2f6   : > { %2462 = vset.pattern.permute.xlu0 %v2818_v50 }
 0x369   : > { %v727_v11 = vpop.xlane.xlu0 %726 }
 0x36a   : > { %v728_v12 = vrot.slane %v727_v11, 4 }
 0x36c   : > { %v729_v23 = vadd.f32 %v728_v12, %v727_v11 }
 0x36e   : > { %v730_v27 = vrot.slane %v729_v23, 2 }
 0x370   : > { %v731_v32 = vadd.f32 %v730_v27, %v729_v23 }
 0x371   : > { %v771_v9 = vpop.permute.xlu0 %770 }
 0x372   : > { %v732_v33 = vrot.slane %v731_v32, 1 }
 0x374   : > { %v733_v34 = vadd.f32 %v732_v33, %v731_v32 }
 0x376   : > { %2132 = vpush %v733_v34 }
 0x3a7   : > { %s2133_s21 = spop %2132 }
 0x3a8   : > { %s735_s24 = smul.f32 0.00024414063, %s2133_s21 }
 0x3aa   : > { %s736_s10 = sadd.f32 1e-08, %s735_s24 }
 0x3ac   : > { %v737_v39 = vstv %s736_s10 }
 0x3ad   : > { %2480 = vrsqrt.f32 %v737_v39 }
 0x3b7   : > { %v2481_v42 = vpop.eup %2480 }
 0x3b8   : > { %2134 = vpush %v2481_v42  ;;  %v901_v42 = vlaneseq }
 0x3b9   : > { %2136 = vpush %v835_v44 }
 0x3ba   : > { %v3098_v44 = vand.u32 127, %v901_v42 }
 0x3bc   : > { %vm984_vm11 = vcmp.lt.s32.totalorder (!%p2046_p7), %v3098_v44, 1  ;;  %vm1061_vm14 = vcmp.lt.s32.totalorder (!%p2046_p7), %v3098_v44, 127 }
 0x3e9   : > { %s2135_s11 = spop %2134 }
 0x3ea   : > { %v740_v45 = vstv %s2135_s11  ;;  %s2137_s13 = spop %2136 }
 0x3eb   : > { %s837_s30 = smul.f32 0.00024414063, %s2137_s13  ;;  %v742_v47 = vmul.f32 %v740_v45, %v2967_v17  ;;  %v744_v61 = vmul.f32 %v740_v45, %v2964_v16 }
 0x3ed   : > { %v838_v49 = vstv %s837_s30  ;;  %752 = vperm.xlu0 %2462, %v742_v47  }
 0x3ee   : > { %v3060_v51 = vsub.f32 %v3029_v46, %v838_v49  ;;  %v3063_v52 = vsub.f32 %v3027_v43, %v838_v49  ;;  %v3066_v54 = vsub.f32 %v3031_v48, %v838_v49  ;;  %v3069_v55 = vsub.f32 %v3036_v53, %v838_v49 }
 0x3ef   : > { %v741_v48 = vmul.f32 %v740_v45, %v2959_v14  ;;  %v743_v53 = vmul.f32 %v740_v45, %v2956_v13  ;;  %v903_v45 = vadd.s32 128, %v3098_v44 }
 0x3f0   : > { %v843_v56 = vmul.f32 %v3060_v51, %v3060_v51  ;;  %v844_v57 = vmul.f32 %v3063_v52, %v3063_v52  ;;  %v845_v59 = vmul.f32 %v3066_v54, %v3066_v54  ;;  %v846_v43 = vmul.f32 %v3069_v55, %v3069_v55 }
 0x3f1   : > { %v3103_v47 = vand.u32 127, %v903_v45 }
 0x3f2   : > { %v847_v46 = vadd.f32 %v844_v57, %v843_v56 }
 0x3f4   : > { %v848_v60 = vadd.f32 %v847_v46, %v845_v59 }
 0x3f6   : > { %v849_v58 = vadd.f32 %v848_v60, %v846_v43 }
 0x3f8   : > { %850 = vadd.xlane.f32.xlu1 %v849_v58 }
 0x409   : > { %747 = vperm.xlu1 %2460, %v741_v48  }
 0x40d   : > { %757 = vperm.xlu1 %2460, %v743_v53  }
 0x411   : > { %762 = vperm.xlu1 %2460, %v744_v61  }
 0x415   : > { %2463 = vset.pattern.permute.xlu1 %v2819_v10 }
 0x416   : > { %774 = vperm.xlu1 %2463, %v2967_v17  }
 0x41a   : > { %2464 = vset.pattern.permute.xlu1 %v2818_v50 }
 0x46c   : > { %v753_v32 = vpop.permute.xlu0 %752 }
 0x46d   : > { %v766_v34 = vmul.f32 %v753_v32, %v3041_v0 }
 0x485   : > { %v851_v62 = vpop.xlane.xlu1 %850 }
 0x486   : > { %v852_v3 = vrot.slane %v851_v62, 4 }
 0x488   : > { %v853_v4 = vadd.f32 %v852_v3, %v851_v62 }
 0x489   : > { %v748_v5 = vpop.permute.xlu1 %747 }
 0x48a   : > { %v854_v6 = vrot.slane %v853_v4, 2  ;;  %v765_v7 = vmul.f32 %v748_v5, %v3039_v63  ;;  %v3127_v5 = vmov 0  }
 0x48c   : > { %v3086_v8 = vadd.f32 %v771_v9, %v765_v7  ;;  %v855_v11 = vadd.f32 %v854_v6, %v853_v4  ;;  %v3129_v6 = vmov 0   ;;  %v3133_v7 = vmov 0  }
 0x48d   : > { %v758_v12 = vpop.permute.xlu1 %757 }
 0x48e   : > { %v856_v23 = vrot.slane %v855_v11, 1  ;;  %v767_v62 = vmul.f32 %v758_v12, %v3043_v1  ;;  %v3135_v1 = vmov 0   ;;  %v2821_v12 = vmov (!%p2046_p7), 0  }
 0x490   : > { %v857_v27 = vadd.f32 %v856_v23, %v855_v11  ;;  %v2820_v11 = vmov (!%p2046_p7), 1   ;;  %v2822_v23 = vmov (!%p2046_p7), 2  }
 0x491   : > { %v763_v33 = vpop.permute.xlu1 %762 }
 0x492   : > { %2138 = vpush %v857_v27  ;;  %v768_v46 = vmul.f32 %v763_v33, %v3045_v2 }
 0x495   : > { %v775_v35 = vpop.permute.xlu1 %774 }
 0x496   : > { %v3089_v36 = vadd.f32 %v775_v35, %v766_v34 }
 0x4c3   : > { %s2139_s14 = spop %2138 }
 0x4c4   : > { %s859_s9 = smul.f32 0.00024414063, %s2139_s14 }
 0x4c6   : > { %s860_s16 = sadd.f32 1e-08, %s859_s9 }
 0x4c8   : > { %v861_v37 = vstv %s860_s16 }
 0x4c9   : > { %2482 = vrsqrt.f32 %v861_v37 }
 0x4d3   : > { %v2483_v63 = vpop.eup %2482 }
 0x4d4   : > { %2140 = vpush %v2483_v63 }
 0x505   : > { %s2141_s17 = spop %2140 }
 0x506   : > { %v864_v38 = vstv %s2141_s17 }
 0x507   : > { %v865_v39 = vmul.f32 %v864_v38, %v2959_v14  ;;  %v867_v40 = vmul.f32 %v864_v38, %v2956_v13  ;;  %v866_v0 = vmul.f32 %v864_v38, %v2967_v17  ;;  %v868_v41 = vmul.f32 %v864_v38, %v2964_v16 }
 0x509   : > { %881 = vperm.xlu0 %2462, %v867_v40   ;;  %871 = vperm.xlu1 %2464, %v865_v39  }
 0x50d   : > { %2466 = vset.pattern.permute.xlu0 %v2819_v10  ;;  %876 = vperm.xlu1 %2464, %v866_v0  }
 0x50e   : > { %782 = vperm.xlu0 %2466, %v2964_v16  }
 0x511   : > { %886 = vperm.xlu1 %2464, %v868_v41  }
 0x512   : > { %2467 = vset.pattern.permute.xlu0 %v2818_v50 }
 0x513   : > { %2484 = vset.pattern.permute.xlu0 (!%p2046_p7), %v2820_v11 }
 0x514   : > { %942 = vperm.xlu0 (!%p2046_p7), %2484, %v2976_v20  }
 0x515   : > { %2465 = vset.pattern.permute.xlu1 %v2819_v10 }
 0x516   : > { %778 = vperm.xlu1 %2465, %v2956_v13  }
 0x518   : > { %947 = vperm.xlu0 (!%p2046_p7), %2484, %v2979_v21  }
 0x51a   : > { %2485 = vset.pattern.permute.xlu1 (!%p2046_p7), %v2820_v11 }
 0x51b   : > { %952 = vperm.xlu1 (!%p2046_p7), %2485, %v2982_v22  }
 0x51c   : > { %2486 = vset.pattern.permute.xlu0 (!%p2046_p7), %v2821_v12 }
 0x51d   : > { %1014 = vperm.xlu0 (!%p2046_p7), %2486, %v2976_v20  }
 0x51f   : > { %957 = vperm.xlu1 (!%p2046_p7), %2485, %v2987_v24  }
 0x521   : > { %1026 = vperm.xlu0 (!%p2046_p7), %2486, %v2987_v24  }
 0x523   : > { %2487 = vset.pattern.permute.xlu1 (!%p2046_p7), %v2821_v12 }
 0x524   : > { %1018 = vperm.xlu1 (!%p2046_p7), %2487, %v2979_v21  }
 0x525   : > { %2489 = vset.pattern.permute.xlu0 (!%p2046_p7), %v2822_v23 }
 0x526   : > { %1095 = vperm.xlu0 (!%p2046_p7), %2489, %v2979_v21  }
 0x528   : > { %1022 = vperm.xlu1 (!%p2046_p7), %2487, %v2982_v22  }
 0x52a   : > { %968 = vrot.lane.b32.xlu0 (!%p2046_p7), %v3086_v8, %s2823_s19 }
 0x52c   : > { %2488 = vset.pattern.permute.xlu1 (!%p2046_p7), %v2822_v23 }
 0x52d   : > { %1091 = vperm.xlu1 (!%p2046_p7), %2488, %v2976_v20  }
 0x531   : > { %1099 = vperm.xlu1 (!%p2046_p7), %2488, %v2982_v22  }
 0x535   : > { %1103 = vperm.xlu1 (!%p2046_p7), %2488, %v2987_v24  }
 0x539   : > { %970 = vrot.lane.b32.xlu1 (!%p2046_p7), %v3089_v36, %s2823_s19 }
 0x588   : > { %v882_v49 = vpop.permute.xlu0 %881  ;;  %v872_v56 = vpop.permute.xlu1 %871 }
 0x589   : > { %v889_v57 = vmul.f32 %v872_v56, %v3060_v51  ;;  %v891_v51 = vmul.f32 %v882_v49, %v3066_v54  ;;  %v3137_v54 = vmov 0  }
 0x58b   : > { %v3107_v59 = vadd.f32 %v889_v57, %v771_v9  ;;  %v3139_v9 = vmov 0   ;;  %v993_v57 = vadd.s32 (!%p2046_p7), 4294967295, %v3098_v44 }
 0x58c   : > { %v877_v50 = vpop.permute.xlu1 %876 }
 0x58d   : > { %v890_v43 = vmul.f32 %v877_v50, %v3063_v52  ;;  %v783_v60 = vpop.permute.xlu0 %782  ;;  %v3125_v52 = vmov 0   ;;  %vm995_vm12 = vcmp.ge.s32.totalorder (!%p2046_p7), %v993_v57, 0 }
 0x58e   : > { %v3111_v58 = vadd.f32 %v783_v60, %v768_v46  ;;  %v994_v46 = vadd.s32 (!%p2046_p7), 4294967295, %v3103_v47 }
 0x58f   : > { %v3113_v10 = vadd.f32 %v890_v43, %v775_v35 }
 0x590   : > { %v887_v48 = vpop.permute.xlu1 %886  ;;  %939 = sbr.rel (%p2046_p7) target bundleno = 1579 (0x62b), region = 60  ;;  %974 = vrot.lane.b32.xlu1 (!%p2046_p7), %v3111_v58, %s2823_s19  ;;  %vm996_vm13 = vcmp.ge.s32.totalorder (!%p2046_p7), %v994_v46, 0 }
 0x591   : > { %v892_v53 = vmul.f32 %v887_v48, %v3069_v55  ;;  %v3131_v55 = vmov 0  }
 0x593   : > { %v3116_v61 = vadd.f32 %v892_v53, %v783_v60  ;;  %v943_v32 = vpop.permute.xlu0 (!%p2046_p7), %942 }
 0x594   : > { %978 = vrot.lane.b32.xlu1 (!%p2046_p7), %v3113_v10, %s2823_s19 }
 0x595   : > { %v779_v3 = vpop.permute.xlu1 %778 }
 0x596   : > { %v3120_v4 = vadd.f32 %v779_v3, %v767_v62  ;;  %v3122_v2 = vadd.f32 %v891_v51, %v779_v3  ;;  %v3189_v51 = vadd.s32 (!%p2046_p7), 1, %v3098_v44  ;;  %v3192_v3 = vadd.s32 (!%p2046_p7), 1, %v3103_v47 }
 0x597   : > { %v948_v34 = vpop.permute.xlu0 %947 }
 0x598   : > { %972 = vrot.lane.b32.xlu0 %v3120_v4, %s2823_s19  ;;  %982 = vrot.lane.b32.xlu1 %v3116_v61, %s2823_s19  ;;  %vm1074_vm15 = vcmp.lt.s32.totalorder %v3189_v51, 128  ;;  %vm1075_vm0 = vcmp.lt.s32.totalorder %v3192_v3, 128 }
 0x59a   : > { %v953_v27 = vpop.permute.xlu1 %952 }
 0x59c   : > { %976 = vrot.lane.b32.xlu0 %v3107_v59, %s2823_s19  ;;  %1047 = vrot.lane.b32.xlu1 %v3089_v36, %s2824_s20  ;;  %v1015_v37 = vpop.permute.xlu0 %1014 }
 0x59e   : > { %v3169_v33 = vpop.permute.xlu1 %957 }
 0x5a0   : > { %980 = vrot.lane.b32.xlu0 %v3122_v2, %s2823_s19  ;;  %1051 = vrot.lane.b32.xlu1 %v3111_v58, %s2824_s20  ;;  %v3173_v38 = vpop.permute.xlu0 %1026 }
 0x5a3   : > { %v3171_v35 = vpop.permute.xlu1 %1018 }
 0x5a4   : > { %1045 = vrot.lane.b32.xlu0 %v3086_v8, %s2824_s20  ;;  %1055 = vrot.lane.b32.xlu1 %v3113_v10, %s2824_s20 }
 0x5a5   : > { %v3175_v40 = vpop.permute.xlu0 %1095 }
 0x5a7   : > { %v1023_v63 = vpop.permute.xlu1 %1022 }
 0x5a8   : > { %1049 = vrot.lane.b32.xlu0 %v3120_v4, %s2824_s20  ;;  %1059 = vrot.lane.b32.xlu1 %v3116_v61, %s2824_s20 }
 0x5a9   : > { %v969_v41 = vpop.permute.xlu0 %968 }
 0x5ac   : > { %1053 = vrot.lane.b32.xlu0 %v3107_v59, %s2824_s20  ;;  %v1092_v39 = vpop.permute.xlu1 %1091 }
 0x5b0   : > { %1057 = vrot.lane.b32.xlu0 %v3122_v2, %s2824_s20  ;;  %v3177_v0 = vpop.permute.xlu1 %1099 }
 0x5b4   : > { %v3179_v42 = vpop.permute.xlu1 %1103 }
 0x5b8   : > { %v971_v49 = vpop.permute.xlu1 %970 }
 0x602   : > { %v975_v50 = vpop.permute.xlu1 %974 }
 0x606   : > { %v979_v53 = vpop.permute.xlu1 %978 }
 0x607   : > { %v986_v23 = vsel %vm984_vm11, %v971_v49, %v979_v53 }
 0x60a   : > { %v973_v45 = vpop.permute.xlu0 %972  ;;  %v983_v7 = vpop.permute.xlu1 %982 }
 0x60e   : > { %v977_v56 = vpop.permute.xlu0 %976 }
 0x60f   : > { %v985_v60 = vsel %vm984_vm11, %v969_v41, %v977_v56  ;;  %v989_v48 = vsel %vm984_vm11, %v977_v56, %v969_v41  ;;  %v990_v41 = vsel %vm984_vm11, %v979_v53, %v971_v49  ;;  %v965_v56 = vmul.f32 %v953_v27, %v3122_v2 }
 0x610   : > { %v1005_v6 = vsel %vm995_vm12, %v989_v48, 0.0  ;;  %v1006_v55 = vsel %vm996_vm13, %v985_v60, 0.0  ;;  %v961_v60 = vmul.f32 %v943_v32, %v3107_v59  ;;  %v962_v48 = vmul.f32 %v948_v34, %v3089_v36 }
 0x611   : > { %v1029_v11 = vmul.f32 %v1015_v37, %v1005_v6  ;;  %v1030_v12 = vmul.f32 %v1015_v37, %v1006_v55  ;;  %v1048_v6 = vpop.permute.xlu1 %1047  ;;  %v1007_v15 = vsel %vm995_vm12, %v990_v41, 0.0  ;;  %v1008_v49 = vsel %vm996_vm13, %v986_v23, 0.0 }
 0x612   : > { %v981_v43 = vpop.permute.xlu0 %980 }
 0x613   : > { %v987_v52 = vsel %vm984_vm11, %v973_v45, %v981_v43  ;;  %v991_v5 = vsel %vm984_vm11, %v981_v43, %v973_v45  ;;  %v964_v45 = vmul.f32 %v953_v27, %v3120_v4  ;;  %v960_v43 = vmul.f32 %v943_v32, %v3086_v8 }
 0x614   : > { %v1009_v54 = vsel %vm995_vm12, %v991_v5, 0.0  ;;  %v1010_v9 = vsel %vm996_vm13, %v987_v52, 0.0  ;;  %v963_v52 = vmul.f32 %v948_v34, %v3113_v10  ;;  %v1038_v32 = vadd.f32 %v1030_v12, %v961_v60 }
 0x615   : > { %v1033_v5 = vmul.f32 %v1023_v63, %v1009_v54  ;;  %v1034_v37 = vmul.f32 %v1023_v63, %v1010_v9  ;;  %v1037_v18 = vadd.f32 %v1029_v11, %v960_v43  ;;  %v988_v63 = vsel %vm984_vm11, %v975_v50, %v983_v7  ;;  %v1052_v12 = vpop.permute.xlu1 %1051 }
 0x616   : > { %v1046_v62 = vpop.permute.xlu0 %1045  ;;  %v992_v54 = vsel %vm984_vm11, %v983_v7, %v975_v50  ;;  %v1032_v11 = vmul.f32 %v3171_v35, %v1008_v49 }
 0x617   : > { %v1041_v41 = vadd.f32 %v1033_v5, %v964_v45  ;;  %v1042_v30 = vadd.f32 %v1034_v37, %v965_v56  ;;  %v1011_v50 = vsel %vm995_vm12, %v992_v54, 0.0 }
 0x618   : > { %v1040_v45 = vadd.f32 %v1032_v11, %v963_v52  ;;  %v966_v52 = vmul.f32 %v3169_v33, %v3111_v58 }
 0x619   : > { %v1056_v56 = vpop.permute.xlu1 %1055 }
 0x61a   : > { %v1050_v1 = vpop.permute.xlu0 %1049  ;;  %v1063_v57 = vsel %vm1061_vm14, %v1048_v6, %v1056_v56  ;;  %v1067_v46 = vsel %vm1061_vm14, %v1056_v56, %v1048_v6  ;;  %v967_v6 = vmul.f32 %v3169_v33, %v3116_v61 }
 0x61b   : > { %v1084_v49 = vsel %vm1074_vm15, %v1063_v57, 0.0 }
 0x61e   : > { %v1054_v55 = vpop.permute.xlu0 %1053 }
 0x61f   : > { %v1062_v53 = vsel %vm1061_vm14, %v1046_v62, %v1054_v55  ;;  %v1066_v27 = vsel %vm1061_vm14, %v1054_v55, %v1046_v62  ;;  %v1031_v62 = vmul.f32 %v3171_v35, %v1007_v15 }
 0x620   : > { %v1082_v19 = vsel %vm1074_vm15, %v1062_v53, 0.0  ;;  %v1083_v34 = vsel %vm1075_vm0, %v1066_v27, 0.0  ;;  %v1060_v27 = vpop.permute.xlu1 %1059 }
 0x621   : > { %v1106_v9 = vmul.f32 %v1092_v39, %v1082_v19  ;;  %v1107_v23 = vmul.f32 %v1092_v39, %v1083_v34  ;;  %v1012_v19 = vsel %vm996_vm13, %v988_v63, 0.0  ;;  %v1039_v7 = vadd.f32 %v1031_v62, %v962_v48 }
 0x622   : > { %v1058_v43 = vpop.permute.xlu0 %1057  ;;  %v1036_v5 = vmul.f32 %v3173_v38, %v1012_v19  ;;  %v1108_v48 = vmul.f32 %v3175_v40, %v1084_v49  ;;  %v1069_v34 = vsel %vm1061_vm14, %v1060_v27, %v1052_v12 }
 0x623   : > { %v1114_v9 = vadd.f32 %v1106_v9, %v1037_v18   ;;  %v1115_v60 = vadd.f32 %v1107_v23, %v1038_v32   ;;  %v1064_v55 = vsel %vm1061_vm14, %v1050_v1, %v1058_v43  ;;  %v1068_v53 = vsel %vm1061_vm14, %v1058_v43, %v1050_v1 }
 0x624   : > { %v1086_v39 = vsel %vm1074_vm15, %v1064_v55, 0.0  ;;  %v1087_v15 = vsel %vm1075_vm0, %v1068_v53, 0.0  ;;  %v1035_v1 = vmul.f32 %v3173_v38, %v1011_v50  ;;  %v1116_v32 = vadd.f32 %v1108_v48, %v1039_v7  }
 0x625   : > { %v1110_v35 = vmul.f32 %v3177_v0, %v1086_v39  ;;  %v1111_v18 = vmul.f32 %v3177_v0, %v1087_v15  ;;  %v1085_v0 = vsel %vm1075_vm0, %v1067_v46, 0.0  ;;  %v1065_v38 = vsel %vm1061_vm14, %v1052_v12, %v1060_v27 }
 0x626   : > { %v1043_v63 = vadd.f32 %v1035_v1, %v966_v52  ;;  %v1044_v54 = vadd.f32 %v1036_v5, %v967_v6  ;;  %v1089_v23 = vsel %vm1075_vm0, %v1069_v34, 0.0  ;;  %v3813_v1 = vmov %v1116_v32 }
 0x627   : > { %v1118_v55 = vadd.f32 %v1110_v35, %v1041_v41   ;;  %v1119_v37 = vadd.f32 %v1111_v18, %v1042_v30   ;;  %v1109_v30 = vmul.f32 %v3175_v40, %v1085_v0  ;;  %v1088_v40 = vsel %vm1074_vm15, %v1065_v38, 0.0 }
 0x628   : > { %v1112_v41 = vmul.f32 %v3179_v42, %v1088_v40  ;;  %v1113_v33 = vmul.f32 %v3179_v42, %v1089_v23 }
 0x629   : > { %v1117_v7 = vadd.f32 %v1109_v30, %v1040_v45   ;;  %v3812_v6 = vmov %v1119_v37 }
 0x62a   : > { %v1120_v5 = vadd.f32 %v1112_v41, %v1043_v63   ;;  %v1121_v52 = vadd.f32 %v1113_v33, %v1044_v54   ;;  %v3814_v54 = vmov %v1115_v60 }
 0x62b PF: > { %1132 = sbr.rel (%p936_p6) target bundleno = 1974 (0x7b6), region = 64  ;;  %p2047_p8 = scmp.ge.s32.totalorder (!%p936_p6), %s2893_s28, 2  ;;  %v3312_v42 = vmov (!%p936_p6), 0   ;;  %v3314_v51 = vmov (!%p936_p6), 0   ;;  %v3316_v3 = vmov (!%p936_p6), 0   ;;  %v3318_v62 = vmov (!%p936_p6), 0   ;;  %v2717_v9 = vphi %v3139_v9, %v1114_v9   ;;  %v2713_v54 = vphi %v3137_v54, %v3814_v54   ;;  %v2709_v1 = vphi %v3135_v1, %v3813_v1   ;;  %v2705_v7 = vphi %v3133_v7, %v1117_v7   ;;  %v2701_v55 = vphi %v3131_v55, %v1118_v55   ;;  %v2697_v6 = vphi %v3129_v6, %v3812_v6   ;;  %v2693_v5 = vphi %v3127_v5, %v1120_v5   ;;  %v2689_v52 = vphi %v3125_v52, %v1121_v52  }
 0x62c   : > { %v3320_v11 = vmov (!%p936_p6), 0   ;;  %v3322_v12 = vmov (!%p936_p6), 0   ;;  %v3324_v43 = vmov (!%p936_p6), 0   ;;  %v3326_v60 = vmov (!%p936_p6), 0  }
 0x632   : > { %1136 = sbr.rel (%p2047_p8) target bundleno = 1779 (0x6f3), region = 68  ;;  %v2825_v53 = vmov (!%p2047_p8), 1   ;;  %v2826_v9 = vmov (!%p2047_p8), 0   ;;  %v2827_v55 = vmov (!%p2047_p8), 2   ;;  %s2828_s22 = smov (!%p2047_p8), 2   ;;  %v1190_v48 = vadd.s32 (!%p2047_p8), 4294967294, %v3098_v44 }
 0x633   : > { %2491 = vset.pattern.permute.xlu1 (!%p2047_p8), %v2825_v53  ;;  %2490 = vset.pattern.permute.xlu0 (!%p2047_p8), %v2825_v53  ;;  %s2829_s23 = smov (!%p2047_p8), 126   ;;  %v1191_v30 = vadd.s32 (!%p2047_p8), 4294967294, %v3103_v47  ;;  %vm1181_vm1 = vcmp.lt.s32.totalorder (!%p2047_p8), %v3098_v44, 2  ;;  %v3376_v63 = vadd.s32 (!%p2047_p8), 2, %v3098_v44  ;;  %v3379_v54 = vadd.s32 (!%p2047_p8), 2, %v3103_v47 }
 0x634   : > { %1149 = vperm.xlu1 (!%p2047_p8), %2491, %v2982_v22   ;;  %1139 = vperm.xlu0 (!%p2047_p8), %2490, %v2976_v20   ;;  %vm1192_vm2 = vcmp.ge.s32.totalorder (!%p2047_p8), %v1190_v48, 0  ;;  %vm1258_vm4 = vcmp.lt.s32.totalorder (!%p2047_p8), %v3098_v44, 126 }
 0x635   : > { %vm1193_vm3 = vcmp.ge.s32.totalorder (!%p2047_p8), %v1191_v30, 0  ;;  %vm1271_vm5 = vcmp.lt.s32.totalorder (!%p2047_p8), %v3376_v63, 128  ;;  %vm1272_vm6 = vcmp.lt.s32.totalorder (!%p2047_p8), %v3379_v54, 128 }
 0x638   : > { %1154 = vperm.xlu1 (!%p2047_p8), %2491, %v2987_v24   ;;  %1144 = vperm.xlu0 (!%p2047_p8), %2490, %v2979_v21  }
 0x63c   : > { %2493 = vset.pattern.permute.xlu1 %v2826_v9  ;;  %2492 = vset.pattern.permute.xlu0 %v2826_v9 }
 0x63d   : > { %1215 = vperm.xlu1 %2493, %v2979_v21   ;;  %1211 = vperm.xlu0 %2492, %v2976_v20  }
 0x641   : > { %1219 = vperm.xlu1 %2493, %v2982_v22   ;;  %1223 = vperm.xlu0 %2492, %v2987_v24  }
 0x645   : > { %2494 = vset.pattern.permute.xlu1 %v2827_v55  ;;  %2495 = vset.pattern.permute.xlu0 %v2827_v55 }
 0x646   : > { %1288 = vperm.xlu1 %2494, %v2976_v20   ;;  %1292 = vperm.xlu0 %2495, %v2979_v21  }
 0x64a   : > { %1296 = vperm.xlu1 %2494, %v2982_v22   ;;  %1165 = vrot.lane.b32.xlu0 %v3086_v8, %s2828_s22 }
 0x64e   : > { %1300 = vperm.xlu1 %2494, %v2987_v24   ;;  %1169 = vrot.lane.b32.xlu0 %v3120_v4, %s2828_s22 }
 0x652   : > { %1167 = vrot.lane.b32.xlu1 %v3089_v36, %s2828_s22  ;;  %1173 = vrot.lane.b32.xlu0 %v3107_v59, %s2828_s22 }
 0x656   : > { %1171 = vrot.lane.b32.xlu1 %v3111_v58, %s2828_s22  ;;  %1177 = vrot.lane.b32.xlu0 %v3122_v2, %s2828_s22 }
 0x65a   : > { %1175 = vrot.lane.b32.xlu1 %v3113_v10, %s2828_s22  ;;  %1242 = vrot.lane.b32.xlu0 %v3086_v8, %s2829_s23 }
 0x65e   : > { %1179 = vrot.lane.b32.xlu1 %v3116_v61, %s2828_s22  ;;  %1246 = vrot.lane.b32.xlu0 %v3120_v4, %s2829_s23 }
 0x662   : > { %1244 = vrot.lane.b32.xlu1 %v3089_v36, %s2829_s23  ;;  %1250 = vrot.lane.b32.xlu0 %v3107_v59, %s2829_s23 }
 0x666   : > { %1248 = vrot.lane.b32.xlu1 %v3111_v58, %s2829_s23  ;;  %1254 = vrot.lane.b32.xlu0 %v3122_v2, %s2829_s23 }
 0x66a   : > { %1252 = vrot.lane.b32.xlu1 %v3113_v10, %s2829_s23 }
 0x66e   : > { %1256 = vrot.lane.b32.xlu1 %v3116_v61, %s2829_s23 }
 0x6b3   : > { %v1150_v50 = vpop.permute.xlu1 %1149  ;;  %v1140_v19 = vpop.permute.xlu0 %1139 }
 0x6b4   : > { %v1161_v53 = vmul.f32 %v1150_v50, %v3120_v4  ;;  %v1162_v9 = vmul.f32 %v1150_v50, %v3122_v2  ;;  %v1157_v55 = vmul.f32 %v1140_v19, %v3086_v8 }
 0x6b7   : > { %v3356_v39 = vpop.permute.xlu1 %1154  ;;  %v1145_v15 = vpop.permute.xlu0 %1144 }
 0x6bc   : > { %v3358_v35 = vpop.permute.xlu1 %1215  ;;  %v1212_v18 = vpop.permute.xlu0 %1211 }
 0x6c0   : > { %v1220_v7 = vpop.permute.xlu1 %1219  ;;  %v3360_v45 = vpop.permute.xlu0 %1223 }
 0x6c5   : > { %v1289_v56 = vpop.permute.xlu1 %1288  ;;  %v3362_v37 = vpop.permute.xlu0 %1292 }
 0x6c9   : > { %v3364_v57 = vpop.permute.xlu1 %1296  ;;  %v1166_v46 = vpop.permute.xlu0 %1165 }
 0x6cd   : > { %v3366_v1 = vpop.permute.xlu1 %1300  ;;  %v1170_v5 = vpop.permute.xlu0 %1169 }
 0x6d1   : > { %v1168_v49 = vpop.permute.xlu1 %1167  ;;  %v1174_v0 = vpop.permute.xlu0 %1173 }
 0x6d2   : > { %v1182_v27 = vsel %vm1181_vm1, %v1166_v46, %v1174_v0  ;;  %v1186_v32 = vsel %vm1181_vm1, %v1174_v0, %v1166_v46  ;;  %v1158_v46 = vmul.f32 %v1140_v19, %v3107_v59  ;;  %v1160_v0 = vmul.f32 %v1145_v15, %v3113_v10 }
 0x6d3   : > { %v1202_v41 = vsel %vm1192_vm2, %v1186_v32, 0.0  ;;  %v1203_v33 = vsel %vm1193_vm3, %v1182_v27, 0.0 }
 0x6d4   : > { %v1226_v11 = vmul.f32 %v1212_v18, %v1202_v41  ;;  %v1227_v12 = vmul.f32 %v1212_v18, %v1203_v33 }
 0x6d5   : > { %v1172_v52 = vpop.permute.xlu1 %1171  ;;  %v1178_v6 = vpop.permute.xlu0 %1177 }
 0x6d6   : > { %v1184_v40 = vsel %vm1181_vm1, %v1170_v5, %v1178_v6  ;;  %v1188_v23 = vsel %vm1181_vm1, %v1178_v6, %v1170_v5  ;;  %v1159_v5 = vmul.f32 %v1145_v15, %v3089_v36  ;;  %v1235_v19 = vadd.f32 %v1227_v12, %v1158_v46 }
 0x6d7   : > { %v1206_v3 = vsel %vm1192_vm2, %v1188_v23, 0.0  ;;  %v1207_v62 = vsel %vm1193_vm3, %v1184_v40, 0.0  ;;  %v1234_v23 = vadd.f32 %v1226_v11, %v1157_v55 }
 0x6d8   : > { %v1230_v6 = vmul.f32 %v1220_v7, %v1206_v3  ;;  %v1231_v18 = vmul.f32 %v1220_v7, %v1207_v62 }
 0x6d9   : > { %v1176_v38 = vpop.permute.xlu1 %1175  ;;  %v1243_v34 = vpop.permute.xlu0 %1242 }
 0x6da   : > { %v1183_v43 = vsel %vm1181_vm1, %v1168_v49, %v1176_v38  ;;  %v1187_v60 = vsel %vm1181_vm1, %v1176_v38, %v1168_v49 }
 0x6db   : > { %v1204_v40 = vsel %vm1192_vm2, %v1187_v60, 0.0  ;;  %v1205_v49 = vsel %vm1193_vm3, %v1183_v43, 0.0  ;;  %v1238_v43 = vadd.f32 %v1230_v6, %v1161_v53  ;;  %v1239_v60 = vadd.f32 %v1231_v18, %v1162_v9 }
 0x6dc   : > { %v1229_v11 = vmul.f32 %v3358_v35, %v1205_v49 }
 0x6dd   : > { %v1180_v42 = vpop.permute.xlu1 %1179  ;;  %v1247_v51 = vpop.permute.xlu0 %1246 }
 0x6de   : > { %v1185_v7 = vsel %vm1181_vm1, %v1172_v52, %v1180_v42  ;;  %v1189_v33 = vsel %vm1181_vm1, %v1180_v42, %v1172_v52  ;;  %v1237_v18 = vadd.f32 %v1229_v11, %v1160_v0 }
 0x6df   : > { %v1208_v52 = vsel %vm1192_vm2, %v1189_v33, 0.0 }
 0x6e1   : > { %v1245_v27 = vpop.permute.xlu1 %1244  ;;  %v1251_v32 = vpop.permute.xlu0 %1250 }
 0x6e2   : > { %v1259_v38 = vsel %vm1258_vm4, %v1243_v34, %v1251_v32  ;;  %v1263_v50 = vsel %vm1258_vm4, %v1251_v32, %v1243_v34  ;;  %v1228_v34 = vmul.f32 %v3358_v35, %v1204_v40 }
 0x6e3   : > { %v1279_v41 = vsel %vm1271_vm5, %v1259_v38, 0.0  ;;  %v1280_v15 = vsel %vm1272_vm6, %v1263_v50, 0.0 }
 0x6e4   : > { %v1303_v3 = vmul.f32 %v1289_v56, %v1279_v41  ;;  %v1304_v62 = vmul.f32 %v1289_v56, %v1280_v15  ;;  %v1209_v56 = vsel %vm1193_vm3, %v1185_v7, 0.0  ;;  %v1236_v6 = vadd.f32 %v1228_v34, %v1159_v5 }
 0x6e5   : > { %v1249_v12 = vpop.permute.xlu1 %1248  ;;  %v1255_v55 = vpop.permute.xlu0 %1254  ;;  %v1233_v49 = vmul.f32 %v3360_v45, %v1209_v56 }
 0x6e6   : > { %v1311_v46 = vadd.f32 %v1303_v3, %v1234_v23   ;;  %v1312_v32 = vadd.f32 %v1304_v62, %v1235_v19   ;;  %v1261_v38 = vsel %vm1258_vm4, %v1247_v51, %v1255_v55  ;;  %v1265_v50 = vsel %vm1258_vm4, %v1255_v55, %v1247_v51 }
 0x6e7   : > { %v1283_v42 = vsel %vm1271_vm5, %v1261_v38, 0.0  ;;  %v1284_v35 = vsel %vm1272_vm6, %v1265_v50, 0.0  ;;  %v1232_v51 = vmul.f32 %v3360_v45, %v1208_v52  ;;  %v1163_v19 = vmul.f32 %v3356_v39, %v3111_v58 }
 0x6e8   : > { %v1307_v53 = vmul.f32 %v3364_v57, %v1283_v42  ;;  %v1308_v9 = vmul.f32 %v3364_v57, %v1284_v35 }
 0x6e9   : > { %v1253_v40 = vpop.permute.xlu1 %1252  ;;  %v1240_v33 = vadd.f32 %v1232_v51, %v1163_v19 }
 0x6ea   : > { %v1315_v62 = vadd.f32 %v1307_v53, %v1238_v43   ;;  %v1316_v3 = vadd.f32 %v1308_v9, %v1239_v60   ;;  %v1260_v48 = vsel %vm1258_vm4, %v1245_v27, %v1253_v40  ;;  %v1264_v30 = vsel %vm1258_vm4, %v1253_v40, %v1245_v27 }
 0x6eb   : > { %v1281_v23 = vsel %vm1271_vm5, %v1260_v48, 0.0  ;;  %v1282_v57 = vsel %vm1272_vm6, %v1264_v30, 0.0  ;;  %v1164_v27 = vmul.f32 %v3356_v39, %v3116_v61 }
 0x6ec   : > { %v1305_v5 = vmul.f32 %v3362_v37, %v1281_v23  ;;  %v1306_v0 = vmul.f32 %v3362_v37, %v1282_v57 }
 0x6ed   : > { %v1257_v41 = vpop.permute.xlu1 %1256  ;;  %v1241_v43 = vadd.f32 %v1233_v49, %v1164_v27 }
 0x6ee   : > { %v1313_v15 = vadd.f32 %v1305_v5, %v1236_v6   ;;  %v1314_v11 = vadd.f32 %v1306_v0, %v1237_v18   ;;  %v1262_v45 = vsel %vm1258_vm4, %v1249_v12, %v1257_v41  ;;  %v1266_v7 = vsel %vm1258_vm4, %v1257_v41, %v1249_v12 }
 0x6ef   : > { %v1285_v37 = vsel %vm1271_vm5, %v1262_v45, 0.0  ;;  %v1286_v60 = vsel %vm1272_vm6, %v1266_v7, 0.0 }
 0x6f0   : > { %v1309_v34 = vmul.f32 %v3366_v1, %v1285_v37  ;;  %v1310_v39 = vmul.f32 %v3366_v1, %v1286_v60  ;;  %v3815_v12 = vmov %v1313_v15  ;;  %v3817_v60 = vmov %v1311_v46 }
 0x6f2   : > { %v1317_v51 = vadd.f32 %v1309_v34, %v1240_v33   ;;  %v1318_v42 = vadd.f32 %v1310_v39, %v1241_v43   ;;  %v3816_v43 = vmov %v1312_v32 }
 0x6f3 PF: > { %1329 = sbr.rel (%p347_p3) target bundleno = 1972 (0x7b4), region = 72  ;;  %v2830_v1 = vmov (!%p347_p3), 1   ;;  %v2831_v63 = vmov (!%p347_p3), 0   ;;  %v2832_v54 = vmov (!%p347_p3), 2   ;;  %s2833_s25 = smov (!%p347_p3), 4   ;;  %v1383_v35 = vadd.s32 (!%p347_p3), 4294967292, %v3098_v44  ;;  %v2749_v60 = vphi %v3326_v60, %v3817_v60   ;;  %v2745_v43 = vphi %v3324_v43, %v3816_v43   ;;  %v2741_v12 = vphi %v3322_v12, %v3815_v12   ;;  %v2737_v11 = vphi %v3320_v11, %v1314_v11   ;;  %v2733_v62 = vphi %v3318_v62, %v1315_v62   ;;  %v2729_v3 = vphi %v3316_v3, %v1316_v3   ;;  %v2725_v51 = vphi %v3314_v51, %v1317_v51   ;;  %v2721_v42 = vphi %v3312_v42, %v1318_v42  }
 0x6f4   : > { %2497 = vset.pattern.permute.xlu1 (!%p347_p3), %v2830_v1  ;;  %2496 = vset.pattern.permute.xlu0 (!%p347_p3), %v2830_v1  ;;  %s2834_s26 = smov (!%p347_p3), 124   ;;  %v1384_v53 = vadd.s32 (!%p347_p3), 4294967292, %v3103_v47  ;;  %vm1374_vm7 = vcmp.lt.s32.totalorder (!%p347_p3), %v3098_v44, 4  ;;  %v3546_v51 = vadd.s32 (!%p347_p3), 4, %v3098_v44  ;;  %v3549_v49 = vadd.s32 (!%p347_p3), 4, %v3103_v47 }
 0x6f5   : > { %1342 = vperm.xlu1 (!%p347_p3), %2497, %v2982_v22   ;;  %1332 = vperm.xlu0 (!%p347_p3), %2496, %v2976_v20   ;;  %vm1385_vm8 = vcmp.ge.s32.totalorder (!%p347_p3), %v1383_v35, 0  ;;  %vm1451_vm10 = vcmp.lt.s32.totalorder (!%p347_p3), %v3098_v44, 124 }
 0x6f6   : > { %vm1386_vm9 = vcmp.ge.s32.totalorder (!%p347_p3), %v1384_v53, 0  ;;  %vm1464_vm11 = vcmp.lt.s32.totalorder (!%p347_p3), %v3546_v51, 128  ;;  %vm1465_vm12 = vcmp.lt.s32.totalorder (!%p347_p3), %v3549_v49, 128 }
 0x6f9   : > { %1347 = vperm.xlu1 (!%p347_p3), %2497, %v2987_v24   ;;  %1337 = vperm.xlu0 (!%p347_p3), %2496, %v2979_v21  }
 0x6fd   : > { %2499 = vset.pattern.permute.xlu1 %v2831_v63  ;;  %2498 = vset.pattern.permute.xlu0 %v2831_v63 }
 0x6fe   : > { %1408 = vperm.xlu1 %2499, %v2979_v21   ;;  %1404 = vperm.xlu0 %2498, %v2976_v20  }
 0x702   : > { %1412 = vperm.xlu1 %2499, %v2982_v22   ;;  %1416 = vperm.xlu0 %2498, %v2987_v24  }
 0x706   : > { %2500 = vset.pattern.permute.xlu1 %v2832_v54  ;;  %2501 = vset.pattern.permute.xlu0 %v2832_v54 }
 0x707   : > { %1481 = vperm.xlu1 %2500, %v2976_v20   ;;  %1485 = vperm.xlu0 %2501, %v2979_v21  }
 0x70b   : > { %1489 = vperm.xlu1 %2500, %v2982_v22   ;;  %1358 = vrot.lane.b32.xlu0 %v3086_v8, %s2833_s25 }
 0x70f   : > { %1493 = vperm.xlu1 %2500, %v2987_v24   ;;  %1362 = vrot.lane.b32.xlu0 %v3120_v4, %s2833_s25 }
 0x713   : > { %1360 = vrot.lane.b32.xlu1 %v3089_v36, %s2833_s25  ;;  %1366 = vrot.lane.b32.xlu0 %v3107_v59, %s2833_s25 }
 0x717   : > { %1364 = vrot.lane.b32.xlu1 %v3111_v58, %s2833_s25  ;;  %1370 = vrot.lane.b32.xlu0 %v3122_v2, %s2833_s25 }
 0x71b   : > { %1368 = vrot.lane.b32.xlu1 %v3113_v10, %s2833_s25  ;;  %1435 = vrot.lane.b32.xlu0 %v3086_v8, %s2834_s26 }
 0x71f   : > { %1372 = vrot.lane.b32.xlu1 %v3116_v61, %s2833_s25  ;;  %1439 = vrot.lane.b32.xlu0 %v3120_v4, %s2834_s26 }
 0x723   : > { %1437 = vrot.lane.b32.xlu1 %v3089_v36, %s2834_s26  ;;  %1443 = vrot.lane.b32.xlu0 %v3107_v59, %s2834_s26 }
 0x727   : > { %1441 = vrot.lane.b32.xlu1 %v3111_v58, %s2834_s26  ;;  %1447 = vrot.lane.b32.xlu0 %v3122_v2, %s2834_s26 }
 0x72b   : > { %1445 = vrot.lane.b32.xlu1 %v3113_v10, %s2834_s26 }
 0x72f   : > { %1449 = vrot.lane.b32.xlu1 %v3116_v61, %s2834_s26 }
 0x774   : > { %v1343_v20 = vpop.permute.xlu1 %1342  ;;  %v1333_v21 = vpop.permute.xlu0 %1332 }
 0x775   : > { %v1354_v43 = vmul.f32 %v1343_v20, %v3120_v4  ;;  %v1355_v37 = vmul.f32 %v1343_v20, %v3122_v2  ;;  %v1350_v60 = vmul.f32 %v1333_v21, %v3086_v8  ;;  %v1351_v34 = vmul.f32 %v1333_v21, %v3107_v59 }
 0x778   : > { %v3526_v22 = vpop.permute.xlu1 %1347  ;;  %v1338_v24 = vpop.permute.xlu0 %1337 }
 0x779   : > { %v1352_v39 = vmul.f32 %v1338_v24, %v3089_v36  ;;  %v1353_v1 = vmul.f32 %v1338_v24, %v3113_v10 }
 0x77d   : > { %v3528_v3 = vpop.permute.xlu1 %1408  ;;  %v1405_v62 = vpop.permute.xlu0 %1404 }
 0x781   : > { %v1413_v11 = vpop.permute.xlu1 %1412  ;;  %v3530_v12 = vpop.permute.xlu0 %1416 }
 0x786   : > { %v1482_v55 = vpop.permute.xlu1 %1481  ;;  %v3532_v46 = vpop.permute.xlu0 %1485 }
 0x78a   : > { %v3534_v32 = vpop.permute.xlu1 %1489  ;;  %v1359_v38 = vpop.permute.xlu0 %1358 }
 0x78e   : > { %v3536_v50 = vpop.permute.xlu1 %1493  ;;  %v1363_v52 = vpop.permute.xlu0 %1362 }
 0x792   : > { %v1361_v56 = vpop.permute.xlu1 %1360  ;;  %v1367_v42 = vpop.permute.xlu0 %1366 }
 0x793   : > { %v1375_v18 = vsel %vm1374_vm7, %v1359_v38, %v1367_v42  ;;  %v1379_v40 = vsel %vm1374_vm7, %v1367_v42, %v1359_v38 }
 0x794   : > { %v1395_v5 = vsel %vm1385_vm8, %v1379_v40, 0.0  ;;  %v1396_v0 = vsel %vm1386_vm9, %v1375_v18, 0.0 }
 0x795   : > { %v1419_v47 = vmul.f32 %v1405_v62, %v1395_v5  ;;  %v1420_v45 = vmul.f32 %v1405_v62, %v1396_v0 }
 0x796   : > { %v1365_v9 = vpop.permute.xlu1 %1364  ;;  %v1371_v6 = vpop.permute.xlu0 %1370 }
 0x797   : > { %v1377_v23 = vsel %vm1374_vm7, %v1363_v52, %v1371_v6  ;;  %v1381_v57 = vsel %vm1374_vm7, %v1371_v6, %v1363_v52  ;;  %v1427_v2 = vadd.f32 %v1419_v47, %v1350_v60  ;;  %v1428_v59 = vadd.f32 %v1420_v45, %v1351_v34 }
 0x798   : > { %v1399_v41 = vsel %vm1385_vm8, %v1381_v57, 0.0  ;;  %v1400_v15 = vsel %vm1386_vm9, %v1377_v23, 0.0 }
 0x799   : > { %v1423_v63 = vmul.f32 %v1413_v11, %v1399_v41  ;;  %v1424_v54 = vmul.f32 %v1413_v11, %v1400_v15 }
 0x79a   : > { %v1369_v48 = vpop.permute.xlu1 %1368  ;;  %v1436_v30 = vpop.permute.xlu0 %1435 }
 0x79b   : > { %v1376_v7 = vsel %vm1374_vm7, %v1361_v56, %v1369_v48  ;;  %v1380_v33 = vsel %vm1374_vm7, %v1369_v48, %v1361_v56  ;;  %v1431_v42 = vadd.f32 %v1423_v63, %v1354_v43  ;;  %v1432_v6 = vadd.f32 %v1424_v54, %v1355_v37 }
 0x79c   : > { %v1397_v52 = vsel %vm1385_vm8, %v1380_v33, 0.0  ;;  %v1398_v56 = vsel %vm1386_vm9, %v1376_v7, 0.0 }
 0x79d   : > { %v1421_v18 = vmul.f32 %v3528_v3, %v1397_v52  ;;  %v1422_v40 = vmul.f32 %v3528_v3, %v1398_v56 }
 0x79e   : > { %v1373_v19 = vpop.permute.xlu1 %1372  ;;  %v1440_v27 = vpop.permute.xlu0 %1439 }
 0x79f   : > { %v1378_v20 = vsel %vm1374_vm7, %v1365_v9, %v1373_v19  ;;  %v1382_v21 = vsel %vm1374_vm7, %v1373_v19, %v1365_v9  ;;  %v1429_v41 = vadd.f32 %v1421_v18, %v1352_v39  ;;  %v1430_v15 = vadd.f32 %v1422_v40, %v1353_v1 }
 0x7a0   : > { %v1401_v9 = vsel %vm1385_vm8, %v1382_v21, 0.0  ;;  %v1356_v39 = vmul.f32 %v3526_v22, %v3111_v58  ;;  %v1357_v1 = vmul.f32 %v3526_v22, %v3116_v61 }
 0x7a2   : > { %v1438_v62 = vpop.permute.xlu1 %1437  ;;  %v1444_v38 = vpop.permute.xlu0 %1443 }
 0x7a3   : > { %v1452_v4 = vsel %vm1451_vm10, %v1436_v30, %v1444_v38  ;;  %v1456_v8 = vsel %vm1451_vm10, %v1444_v38, %v1436_v30 }
 0x7a4   : > { %v1472_v36 = vsel %vm1464_vm11, %v1452_v4, 0.0  ;;  %v1473_v10 = vsel %vm1465_vm12, %v1456_v8, 0.0 }
 0x7a5   : > { %v1496_v24 = vmul.f32 %v1482_v55, %v1472_v36  ;;  %v1497_v11 = vmul.f32 %v1482_v55, %v1473_v10  ;;  %v1402_v55 = vsel %vm1386_vm9, %v1378_v20, 0.0 }
 0x7a6   : > { %v1442_v48 = vpop.permute.xlu1 %1441  ;;  %v1448_v30 = vpop.permute.xlu0 %1447  ;;  %v1426_v7 = vmul.f32 %v3530_v12, %v1402_v55 }
 0x7a7   : > { %v1504_v60 = vadd.f32 %v1496_v24, %v1427_v2   ;;  %v1505_v43 = vadd.f32 %v1497_v11, %v1428_v59   ;;  %v1454_v23 = vsel %vm1451_vm10, %v1440_v27, %v1448_v30  ;;  %v1458_v57 = vsel %vm1451_vm10, %v1448_v30, %v1440_v27 }
 0x7a8   : > { %v1476_v5 = vsel %vm1464_vm11, %v1454_v23, 0.0  ;;  %v1477_v3 = vsel %vm1465_vm12, %v1458_v57, 0.0  ;;  %v1425_v27 = vmul.f32 %v3530_v12, %v1401_v9  ;;  %v1434_v52 = vadd.f32 %v1426_v7, %v1357_v1 }
 0x7a9   : > { %v1500_v0 = vmul.f32 %v3534_v32, %v1476_v5  ;;  %v1501_v19 = vmul.f32 %v3534_v32, %v1477_v3 }
 0x7aa   : > { %v1446_v47 = vpop.permute.xlu1 %1445  ;;  %v1433_v38 = vadd.f32 %v1425_v27, %v1356_v39 }
 0x7ab   : > { %v1508_v45 = vadd.f32 %v1500_v0, %v1431_v42   ;;  %v1509_v3 = vadd.f32 %v1501_v19, %v1432_v6   ;;  %v1453_v35 = vsel %vm1451_vm10, %v1438_v62, %v1446_v47  ;;  %v1457_v53 = vsel %vm1451_vm10, %v1446_v47, %v1438_v62 }
 0x7ac   : > { %v1474_v33 = vsel %vm1464_vm11, %v1453_v35, 0.0  ;;  %v1475_v32 = vsel %vm1465_vm12, %v1457_v53, 0.0 }
 0x7ad   : > { %v1498_v37 = vmul.f32 %v3532_v46, %v1474_v33  ;;  %v1499_v34 = vmul.f32 %v3532_v46, %v1475_v32 }
 0x7ae   : > { %v1450_v63 = vpop.permute.xlu1 %1449 }
 0x7af   : > { %v1506_v12 = vadd.f32 %v1498_v37, %v1429_v41   ;;  %v1507_v11 = vadd.f32 %v1499_v34, %v1430_v15   ;;  %v1455_v54 = vsel %vm1451_vm10, %v1442_v48, %v1450_v63  ;;  %v1459_v62 = vsel %vm1451_vm10, %v1450_v63, %v1442_v48 }
 0x7b0   : > { %v1478_v46 = vsel %vm1464_vm11, %v1455_v54, 0.0  ;;  %v1479_v58 = vsel %vm1465_vm12, %v1459_v62, 0.0  ;;  %v3818_v62 = vmov %v1508_v45 }
 0x7b1   : > { %v1502_v56 = vmul.f32 %v3536_v50, %v1478_v46  ;;  %v1503_v61 = vmul.f32 %v3536_v50, %v1479_v58 }
 0x7b3   : > { %v1510_v51 = vadd.f32 %v1502_v56, %v1433_v38   ;;  %v1511_v42 = vadd.f32 %v1503_v61, %v1434_v52  }
 0x7b4 PF: > { %v3819_v52 = vmov %v2753_v42  ;;  %v3820_v5 = vmov %v2757_v51  ;;  %v3821_v6 = vmov %v2761_v3  ;;  %v3822_v55 = vmov %v2765_v62  ;;  %v2781_v60 = vphi %v2749_v60, %v1504_v60   ;;  %v2777_v43 = vphi %v2745_v43, %v1505_v43   ;;  %v2773_v12 = vphi %v2741_v12, %v1506_v12   ;;  %v2769_v11 = vphi %v2737_v11, %v1507_v11   ;;  %v2765_v62 = vphi %v2733_v62, %v3818_v62   ;;  %v2761_v3 = vphi %v2729_v3, %v1509_v3   ;;  %v2757_v51 = vphi %v2725_v51, %v1510_v51   ;;  %v2753_v42 = vphi %v2721_v42, %v1511_v42  }
 0x7b5   : > { %v3823_v7 = vmov %v2769_v11  ;;  %v3824_v1 = vmov %v2773_v12  ;;  %v3825_v54 = vmov %v2777_v43  ;;  %v3826_v9 = vmov %v2781_v60 }
 0x7b6 PF: > { %v2835_v44 = vmov 3   ;;  %v2836_v22 = vmov 7   ;;  %vm1690_vm5 = vcmask 261120   ;;  %s2839_s16 = smov [#allocation4]   ;;  %p2158_p9 = scmp.eq.s32.totalorder %s2893_s28, 2  ;;  %v2813_v9 = vphi %v2717_v9, %v3826_v9   ;;  %v2809_v54 = vphi %v2713_v54, %v3825_v54   ;;  %v2805_v1 = vphi %v2709_v1, %v3824_v1   ;;  %v2801_v7 = vphi %v2705_v7, %v3823_v7   ;;  %v2797_v55 = vphi %v2701_v55, %v3822_v55   ;;  %v2793_v6 = vphi %v2697_v6, %v3821_v6   ;;  %v2789_v5 = vphi %v2693_v5, %v3820_v5   ;;  %v2785_v52 = vphi %v2689_v52, %v3819_v52  }
 0x7b7   : > { %2503 = vset.pattern.permute.xlu1 %v2835_v44  ;;  %2502 = vset.pattern.permute.xlu0 %v2835_v44  ;;  %s1933_s17 = sshll.u32 %s2839_s16, 4  ;;  %s1934_s17 = int_to_ptr.vmem [resolvable:$true] %s1933_s17 }
 0x7b8   : > { %1537 = vperm.xlu1 %2503, %v2956_v13   ;;  %1529 = vperm.xlu0 %2502, %v2959_v14   ;;  %s2521_s19 = scalar_lea.vmem %s1934_s17, 512  ;;  %p2528_p13 = scmp.lt.s32.totalorder %s1934_s17, %s1934_s17 }
 0x7b9   : > { %2094 = vmatprep.mubr.msk.f32.mxu1 %vm1690_vm5, %v2990_v25  ;;  %p2522_p10 = scmp.ne.s32.totalorder %s1934_s17, %s2521_s19  ;;  %p2529_p0 = scmp.lt.s32.totalorder %s2521_s19, %s2521_s19 }
 0x7bb   : > { %p2523_p11 = pnand %p2522_p10, %p2158_p9  ;;  %p2530_p1 = por %p2529_p0, %p2528_p13 }
 0x7bc   : > { %2504 = vset.pattern.permute.xlu1 %v2836_v22  ;;  %1533 = vperm.xlu0 %2502, %v2967_v17  }
 0x7bd   : > { %1561 = vperm.xlu1 %2504, %v2959_v14   ;;  %p2524_p12 = pneg %p2523_p11 }
 0x7bf   : > { %p2531_p2 = pnand %p2530_p1, %p2524_p12 }
 0x7c0   : > { %2505 = vset.pattern.permute.xlu0 %v2836_v22 }
 0x7c1   : > { %2506 = vset.pattern.permute.xlu1 %v2835_v44  ;;  %1565 = vperm.xlu0 %2505, %v2967_v17  }
 0x7c2   : > { %1541 = vperm.xlu1 %2506, %v2964_v16  }
 0x7c5   : > { %1573 = vperm.xlu0 %2505, %v2964_v16  }
 0x7c6   : > { %2507 = vset.pattern.permute.xlu1 %v2836_v22 }
 0x7c7   : > { %1569 = vperm.xlu1 %2507, %v2956_v13  }
 0x837   : > { %v1538_v12 = vpop.permute.xlu1 %1537  ;;  %v1530_v50 = vpop.permute.xlu0 %1529 }
 0x838   : > { %v1545_v51 = vadd.f32 %v2809_v54, %v1530_v50  ;;  %v1544_v8 = vadd.f32 %v2813_v9, %v1530_v50  ;;  %v1548_v18 = vadd.f32 %v2797_v55, %v1538_v12 }
 0x83a   : > { %vm1553_vm13 = vcmp.gt.f32.partialorder %v1545_v51, 0.0  ;;  %vm1552_vm15 = vcmp.gt.f32.partialorder %v1544_v8, 0.0  ;;  %vm1556_vm1 = vcmp.gt.f32.partialorder %v1548_v18, 0.0 }
 0x83b   : > { %v1534_v49 = vpop.permute.xlu0 %1533 }
 0x83c   : > { %v1562_v43 = vpop.permute.xlu1 %1561  ;;  %v1547_v4 = vadd.f32 %v2801_v7, %v1534_v49  ;;  %v1546_v2 = vadd.f32 %v2805_v1, %v1534_v49  ;;  %v1549_v7 = vadd.f32 %v2793_v6, %v1538_v12 }
 0x83d   : > { %v1577_v60 = vmul.f32 %v1562_v43, %v1545_v51  ;;  %v1576_v24 = vmul.f32 %v1562_v43, %v1544_v8 }
 0x83e   : > { %vm1555_vm14 = vcmp.gt.f32.partialorder %v1547_v4, 0.0  ;;  %vm1554_vm0 = vcmp.gt.f32.partialorder %v1546_v2, 0.0  ;;  %vm1557_vm3 = vcmp.gt.f32.partialorder %v1549_v7, 0.0 }
 0x83f   : > { %v3686_v59 = vsel %vm1553_vm13, %v1545_v51, %v1577_v60  ;;  %v1584_v23 = vsel %vm1552_vm15, %v1544_v8, %v1576_v24  ;;  %v2837_v60 = vmov 4  }
 0x840   : > { %v1566_v36 = vpop.permute.xlu0 %1565  ;;  %2508 = vset.pattern.permute.xlu0 %v2837_v60  ;;  %2509 = vset.pattern.permute.xlu1 %v2837_v60 }
 0x841   : > { %v1578_v10 = vmul.f32 %v1566_v36, %v1546_v2  ;;  %v1579_v20 = vmul.f32 %v1566_v36, %v1547_v4  ;;  %v1542_v21 = vpop.permute.xlu1 %1541 }
 0x842   : > { %v1550_v42 = vadd.f32 %v2789_v5, %v1542_v21  ;;  %v1551_v62 = vadd.f32 %v2785_v52, %v1542_v21 }
 0x843   : > { %v3688_v11 = vsel %vm1555_vm14, %v1547_v4, %v1579_v20  ;;  %v1586_v48 = vsel %vm1554_vm0, %v1546_v2, %v1578_v10 }
 0x844   : > { %v1574_v40 = vpop.permute.xlu0 %1573  ;;  %v1592_v3 = vadd.f32 %v1586_v48, %v1584_v23  ;;  %vm1558_vm2 = vcmp.gt.f32.partialorder %v1550_v42, 0.0  ;;  %v1776_v61 = vadd.f32 %v3688_v11, %v3686_v59  ;;  %vm1559_vm4 = vcmp.gt.f32.partialorder %v1551_v62, 0.0 }
 0x845   : > { %v1582_v57 = vmul.f32 %v1574_v40, %v1550_v42  ;;  %v1583_v44 = vmul.f32 %v1574_v40, %v1551_v62 }
 0x846   : > { %v1570_v30 = vpop.permute.xlu1 %1569 }
 0x847   : > { %v1580_v9 = vmul.f32 %v1570_v30, %v1548_v18  ;;  %v1590_v41 = vsel %vm1558_vm2, %v1550_v42, %v1582_v57  ;;  %v1581_v39 = vmul.f32 %v1570_v30, %v1549_v7  ;;  %v1591_v50 = vsel %vm1559_vm4, %v1551_v62, %v1583_v44 }
 0x849   : > { %v1588_v0 = vsel %vm1556_vm1, %v1548_v18, %v1580_v9  ;;  %v1589_v46 = vsel %vm1557_vm3, %v1549_v7, %v1581_v39 }
 0x84a   : > { %v1593_v19 = vadd.f32 %v1592_v3, %v1588_v0  ;;  %v1777_v12 = vadd.f32 %v1776_v61, %v1589_v46 }
 0x84c   : > { %v1594_v15 = vadd.f32 %v1593_v19, %v1590_v41  ;;  %v1778_v52 = vadd.f32 %v1777_v12, %v1591_v50 }
 0x84e   : > { %1595 = vadd.xlane.f32.xlu1 %v1594_v15 }
 0x8db   : > { %v1596_v47 = vpop.xlane.xlu1 %1595 }
 0x8dc   : > { %v1597_v45 = vrot.slane %v1596_v47, 4 }
 0x8de   : > { %v1598_v5 = vadd.f32 %v1597_v45, %v1596_v47 }
 0x8e0   : > { %v1599_v55 = vrot.slane %v1598_v5, 2 }
 0x8e2   : > { %v1600_v35 = vadd.f32 %v1599_v55, %v1598_v5 }
 0x8e4   : > { %v1601_v53 = vrot.slane %v1600_v35, 1 }
 0x8e6   : > { %v1602_v27 = vadd.f32 %v1601_v53, %v1600_v35  ;;  %v2838_v53 = vmov 5  }
 0x8e8   : > { %2142 = vpush %v1602_v27 }
 0x919   : > { %s2143_s29 = spop %2142 }
 0x91a   : > { %s1604_s15 = smul.f32 0.00024414063, %s2143_s29 }
 0x91c   : > { %v1605_v33 = vstv %s1604_s15 }
 0x91d   : > { %v3691_v32 = vsub.f32 %v1584_v23, %v1605_v33  ;;  %v3693_v37 = vsub.f32 %v1586_v48, %v1605_v33  ;;  %v3695_v34 = vsub.f32 %v1588_v0, %v1605_v33  ;;  %v3697_v1 = vsub.f32 %v1590_v41, %v1605_v33 }
 0x91f   : > { %v1610_v63 = vmul.f32 %v3691_v32, %v3691_v32  ;;  %v1611_v54 = vmul.f32 %v3693_v37, %v3693_v37  ;;  %v1612_v6 = vmul.f32 %v3695_v34, %v3695_v34  ;;  %v1613_v58 = vmul.f32 %v3697_v1, %v3697_v1 }
 0x921   : > { %v1614_v38 = vadd.f32 %v1611_v54, %v1610_v63 }
 0x923   : > { %v1615_v56 = vadd.f32 %v1614_v38, %v1612_v6 }
 0x925   : > { %v1616_v22 = vadd.f32 %v1615_v56, %v1613_v58 }
 0x927   : > { %1617 = vadd.xlane.f32.xlu0 %v1616_v22 }
 0x92b   : > { %1779 = vadd.xlane.f32.xlu0 %v1778_v52 }
 0x9b4   : > { %v1618_v51 = vpop.xlane.xlu0 %1617 }
 0x9b5   : > { %v1619_v49 = vrot.slane %v1618_v51, 4 }
 0x9b7   : > { %v1620_v43 = vadd.f32 %v1619_v49, %v1618_v51 }
 0x9b8   : > { %v1780_v10 = vpop.xlane.xlu0 %1779 }
 0x9b9   : > { %v1621_v4 = vrot.slane %v1620_v43, 2  ;;  %v1781_v20 = vrot.slane %v1780_v10, 4 }
 0x9bb   : > { %v1622_v8 = vadd.f32 %v1621_v4, %v1620_v43  ;;  %v1782_v21 = vadd.f32 %v1781_v20, %v1780_v10 }
 0x9bd   : > { %v1623_v2 = vrot.slane %v1622_v8, 1  ;;  %v1783_v24 = vrot.slane %v1782_v21, 2 }
 0x9bf   : > { %v1624_v36 = vadd.f32 %v1623_v2, %v1622_v8  ;;  %v1784_v18 = vadd.f32 %v1783_v24, %v1782_v21 }
 0x9c1   : > { %2144 = vpush %v1624_v36  ;;  %v1785_v40 = vrot.slane %v1784_v18, 1 }
 0x9c3   : > { %v1786_v30 = vadd.f32 %v1785_v40, %v1784_v18 }
 0x9f2   : > { %s2145_s12 = spop %2144 }
 0x9f3   : > { %s1626_s18 = smul.f32 0.00024414063, %s2145_s12 }
 0x9f5   : > { %s1627_s21 = sadd.f32 1e-08, %s1626_s18 }
 0x9f7   : > { %v1628_v42 = vstv %s1627_s21 }
 0x9f8   : > { %2517 = vrsqrt.f32 %v1628_v42 }
 0xa02   : > { %v2518_v48 = vpop.eup %2517 }
 0xa03   : > { %2146 = vpush %v2518_v48 }
 0xa04   : > { %2148 = vpush %v1786_v30 }
 0xa34   : > { %s2147_s24 = spop %2146 }
 0xa35   : > { %v1631_v23 = vstv %s2147_s24  ;;  %s2149_s10 = spop %2148 }
 0xa36   : > { %s1788_s11 = smul.f32 0.00024414063, %s2149_s10  ;;  %v1632_v57 = vmul.f32 %v1631_v23, %v2959_v14  ;;  %v1633_v35 = vmul.f32 %v1631_v23, %v2967_v17  ;;  %v1634_v27 = vmul.f32 %v1631_v23, %v2956_v13  ;;  %v1635_v7 = vmul.f32 %v1631_v23, %v2964_v16 }
 0xa38   : > { %v1789_v9 = vstv %s1788_s11  ;;  %1638 = vperm.xlu0 %2508, %v1632_v57  }
 0xa39   : > { %v3714_v3 = vsub.f32 %v3686_v59, %v1789_v9  ;;  %v3717_v0 = vsub.f32 %v3688_v11, %v1789_v9  ;;  %v3719_v19 = vsub.f32 %v1589_v46, %v1789_v9  ;;  %v3721_v41 = vsub.f32 %v1591_v50, %v1789_v9 }
 0xa3b   : > { %v1794_v15 = vmul.f32 %v3714_v3, %v3714_v3  ;;  %v1795_v47 = vmul.f32 %v3717_v0, %v3717_v0  ;;  %v1796_v45 = vmul.f32 %v3719_v19, %v3719_v19  ;;  %v1797_v59 = vmul.f32 %v3721_v41, %v3721_v41 }
 0xa3d   : > { %v1798_v5 = vadd.f32 %v1795_v47, %v1794_v15 }
 0xa3f   : > { %v1799_v55 = vadd.f32 %v1798_v5, %v1796_v45  ;;  %v3828_v5 = vld [vmem:[#allocation9_spill] sm:$0xff] }
 0xa41   : > { %v1800_v11 = vadd.f32 %v1799_v55, %v1797_v59 }
 0xa43   : > { %1801 = vadd.xlane.f32.xlu1 %v1800_v11 }
 0xa54   : > { %1643 = vperm.xlu1 %2509, %v1633_v35  }
 0xa58   : > { %2510 = vset.pattern.permute.xlu1 %v2838_v53 }
 0xa59   : > { %1661 = vperm.xlu1 %2510, %v2959_v14  }
 0xa5d   : > { %1665 = vperm.xlu1 %2510, %v2967_v17  }
 0xa61   : > { %2511 = vset.pattern.permute.xlu1 %v2837_v60 }
 0xa62   : > { %1648 = vperm.xlu1 %2511, %v1634_v27  }
 0xa66   : > { %1653 = vperm.xlu1 %2511, %v1635_v7   ;;  %v3830_v7 = vld [vmem:[#allocation7_spill] sm:$0xff] }
 0xa6a   : > { %2512 = vset.pattern.permute.xlu1 %v2838_v53  ;;  %v3829_v53 = vld [vmem:[#allocation8_spill] sm:$0xff] }
 0xa6b   : > { %1669 = vperm.xlu1 %2512, %v2956_v13  }
 0xa6f   : > { %1673 = vperm.xlu1 %2512, %v2964_v16  }
 0xa73   : > { %2513 = vset.pattern.permute.xlu1 %v2837_v60 }
 0xab7   : > { %v1639_v38 = vpop.permute.xlu0 %1638 }
 0xab8   : > { %v1656_v56 = vmul.f32 %v1639_v38, %v3691_v32 }
 0xad0   : > { %v1802_v33 = vpop.xlane.xlu1 %1801 }
 0xad1   : > { %v1803_v39 = vrot.slane %v1802_v33, 4 }
 0xad3   : > { %v1804_v63 = vadd.f32 %v1803_v39, %v1802_v33 }
 0xad4   : > { %v1644_v54 = vpop.permute.xlu1 %1643 }
 0xad5   : > { %v1805_v62 = vrot.slane %v1804_v63, 2  ;;  %v1657_v61 = vmul.f32 %v1644_v54, %v3693_v37 }
 0xad7   : > { %v1806_v6 = vadd.f32 %v1805_v62, %v1804_v63 }
 0xad8   : > { %v1662_v46 = vpop.permute.xlu1 %1661 }
 0xad9   : > { %v1807_v58 = vrot.slane %v1806_v6, 1  ;;  %v1676_v12 = vadd.f32 %v1662_v46, %v1656_v56 }
 0xadb   : > { %v1808_v44 = vadd.f32 %v1807_v58, %v1806_v6 }
 0xadc   : > { %v1666_v22 = vpop.permute.xlu1 %1665 }
 0xadd   : > { %v1677_v50 = vadd.f32 %v1666_v22, %v1657_v61  ;;  %2150 = vpush %v1808_v44 }
 0xadf   : > { %v2112_v52 = vpack.c.bf16 %v1677_v50, %v1676_v12 }
 0xae1   : > { %v1649_v51 = vpop.permute.xlu1 %1648  ;;  %2113 = vmatprep.subr.bf16.mxu1 %v2112_v52 }
 0xae2   : > { %2115 = vmatpush3.bf16.msra.mxu1 %v2112_v52  ;;  %v1658_v4 = vmul.f32 %v1649_v51, %v3695_v34 }
 0xae5   : > { %v1654_v49 = vpop.permute.xlu1 %1653 }
 0xae6   : > { %v1659_v8 = vmul.f32 %v1654_v49, %v3697_v1 }
 0xaea   : > { %v1670_v43 = vpop.permute.xlu1 %1669 }
 0xaeb   : > { %v1678_v36 = vadd.f32 %v1670_v43, %v1658_v4 }
 0xaee   : > { %v1674_v2 = vpop.permute.xlu1 %1673 }
 0xaef   : > { %v1679_v32 = vadd.f32 %v1674_v2, %v1659_v8 }
 0xaf1   : > { %v2116_v10 = vpack.c.bf16 %v1679_v32, %v1678_v36 }
 0xaf3   : > { %2117 = vmatprep.subr.bf16.mxu1 %v2116_v10 }
 0xaf4   : > { %2119 = vmatpush3.bf16.msra.mxu1 %v2116_v10 }
 0xaf7   : > { %2095 = vmatmul.mubr.msk.f32.vlgmr.msra.gmra.mrb[0].mxu1 %vm1690_vm5, %v2993_v26 }
 0xaf8   : > { %2105 = vmatprep.mubr.msk.f32.mxu1 %vm1690_vm5, %v2990_v25 }
 0xb0e   : > { %s2151_s13 = spop %2150 }
 0xb0f   : > { %s1810_s30 = smul.f32 0.00024414063, %s2151_s13 }
 0xb11   : > { %s1811_s14 = sadd.f32 1e-08, %s1810_s30 }
 0xb13   : > { %v1812_v37 = vstv %s1811_s14 }
 0xb14   : > { %2519 = vrsqrt.f32 %v1812_v37 }
 0xb1e   : > { %v2520_v20 = vpop.eup %2519 }
 0xb1f   : > { %2152 = vpush %v2520_v20 }
 0xb50   : > { %s2153_s9 = spop %2152 }
 0xb51   : > { %v1815_v21 = vstv %s2153_s9 }
 0xb52   : > { %v1816_v24 = vmul.f32 %v1815_v21, %v2959_v14  ;;  %v1817_v34 = vmul.f32 %v1815_v21, %v2967_v17  ;;  %v1818_v1 = vmul.f32 %v1815_v21, %v2956_v13  ;;  %v1819_v42 = vmul.f32 %v1815_v21, %v2964_v16 }
 0xb53   : > { %v3827_v14 = vmov 0  }
 0xb54   : > { %1827 = vperm.xlu0 %2508, %v1817_v34   ;;  %1822 = vperm.xlu1 %2513, %v1816_v24  }
 0xb58   : > { %1837 = vperm.xlu0 %2508, %v1819_v42   ;;  %1832 = vperm.xlu1 %2513, %v1818_v1  }
 0xb5c   : > { %2515 = vset.pattern.permute.xlu0 %v3827_v14  ;;  %2514 = vset.pattern.permute.xlu1 %v3827_v14 }
 0xb5d   : > { %1687 = vperm.xlu0 %2515, %v2999_v29   ;;  %1682 = vperm.xlu1 %2514, %v2996_v28  }
 0xb61   : > { %2516 = vset.pattern.permute.xlu0 %v2837_v60 }
 0xbd3   : > { %v1823_v13 = vpop.permute.xlu1 %1822  ;;  %v1828_v16 = vpop.permute.xlu0 %1827 }
 0xbd4   : > { %v1840_v17 = vmul.f32 %v1823_v13, %v3714_v3  ;;  %v1841_v18 = vmul.f32 %v1828_v16, %v3717_v0  ;;  %v2096_v0 = vpop.f32.mrb[0].mxu1 }
 0xbd5   : > { %v1763_v47 = vpop.f32.mrb[1].mxu1 }
 0xbd6   : > { %v1844_v40 = vadd.f32 %v1840_v17, %v1662_v46  ;;  %v1845_v48 = vadd.f32 %v1841_v18, %v1666_v22 }
 0xbd7   : > { %v1833_v30 = vpop.permute.xlu1 %1832  ;;  %v1838_v25 = vpop.permute.xlu0 %1837 }
 0xbd8   : > { %v1842_v23 = vmul.f32 %v1833_v30, %v3719_v19  ;;  %v1843_v57 = vmul.f32 %v1838_v25, %v3721_v41  ;;  %v2120_v9 = vpack.c.bf16 %v1845_v48, %v1844_v40 }
 0xbda   : > { %v1846_v29 = vadd.f32 %v1842_v23, %v1670_v43  ;;  %v1847_v15 = vadd.f32 %v1843_v57, %v1674_v2  ;;  %2121 = vmatprep.subr.bf16.mxu1 %v2120_v9 }
 0xbdb   : > { %2123 = vmatpush3.bf16.msra.mxu1 %v2120_v9 }
 0xbdc   : > { %v2124_v28 = vpack.c.bf16 %v1847_v15, %v1846_v29  ;;  %v1688_v60 = vpop.permute.xlu0 %1687  ;;  %v1683_v3 = vpop.permute.xlu1 %1682 }
 0xbdd   : > { %v1769_v45 = vadd.f32 %v2096_v0, %v1688_v60  ;;  %v1764_v19 = vadd.f32 %v1763_v47, %v1683_v3 }
 0xbde   : > { %2125 = vmatprep.subr.bf16.mxu1 %v2124_v28 }
 0xbdf   : > { %2127 = vmatpush3.bf16.msra.mxu1 %v2124_v28  ;;  %v1773_v41 = vadd.f32 %v1769_v45, %v3003_v31  ;;  %v1772_v59 = vadd.f32 %v1764_v19, %v3828_v5 }
 0xbe1   : > { %1775 = vst [vmem:[#allocation4 + $0x10] sm:$0xff] %v1773_v41  ;;  %1774 = vst [vmem:[#allocation4] sm:$0xff] %v1772_v59 }
 0xbe2   : > { %2106 = vmatmul.mubr.msk.f32.vlgmr.msra.gmra.mrb[2].mxu1 %vm1690_vm5, %v2993_v26 }
 0xcb5   : > { %v2107_v55 = vpop.f32.mrb[2].mxu1 }
 0xcb6   : > { %v1920_v11 = vadd.f32 %v2107_v55, %v1688_v60  ;;  %v1914_v35 = vpop.f32.mrb[3].mxu1 }
 0xcb7   : > { %v1915_v26 = vadd.f32 %v1914_v35, %v1683_v3 }
 0xcb8   : > { %v1924_v27 = vadd.f32 %v1920_v11, %v3829_v53 }
 0xcb9   : > { %v1923_v33 = vadd.f32 %v1915_v26, %v3830_v7 }
 0xcba   : > { %1926 = vst [vmem:[#allocation4 + $0x18] sm:$0xff] %v1924_v27 }
 0xcbb   : > { %1925 = vst [vmem:[#allocation4 + $0x8] sm:$0xff] %v1923_v33 }
 0xcbc   : > { %2534 = shalt.err (!%p2531_p2)
}
 0xcbd   : > { %s2535_s23 = scalar_lea.hbm %s3803_s8, 512 }
 0xcbe   : > { %p2536_p3 = scmp.ne.s32.totalorder %s3803_s8, %s2535_s23  ;;  %p2541_p6 = scmp.lt.u32.totalorder %s2535_s23, %s3803_s8 }
 0xcc0   : > { %p2537_p4 = pnand %p2536_p3, %p2158_p9 }
 0xcc2   : > { %p2538_p5 = pneg %p2537_p4 }
 0xcc4   : > { %p2543_p7 = pnand %p2541_p6, %p2538_p5 }
 0xcc6   : > { %2546 = shalt.err (!%p2543_p7)
}
 0xcc7   : > { %s2840_s12 = smov 256   ;;  %s2841_s18 = smov 16  }
 0xcc8   : > { %2155 = dma.vmem_to_hbm [thread:$0]  (%p2158_p9), %s1934_s17, 512, %s3803_s8, [#allocation5], %s2840_s12, %s2840_s12, %s2841_s18  }
 0xcc9   : > { %2680 = dma.done.wait (%p2158_p9), [#allocation5], 512  }
 0xcca   : > { %2682 = vsyncadd (%p2158_p9), [#allocation5], 4294966784 }
 0xccb PF: > { %s19_s27 = sadd.s32 1, %s2685_s27  }
 0xccc   : > { %p16_p8 = scmp.ge.s32.totalorder %s19_s27, 5  }
 0xcce   :  { %18 = sbr.rel (!%p16_p8) target bundleno = 1 (0x1), region = 111 }
 0xcd5   :  { %1949 = vsyncpa [#allocation5], 1 }
 0xcd6   :  { %1951 = vsyncpa [#allocation5 + $0x1], 1 }

</bundles_post_ra>
